<compile_context>
chip_gen: v7x
topology: tpu7x:2x2x1
jax: 0.10.0
libtpu: 0.0.40
codegen_flags: <defaults>
</compile_context>

<pallas_src>
import math
import functools

import jax
import jax.numpy as jnp
import numpy as np
from jax.experimental import pallas as pl
from jax.experimental.pallas import tpu as pltpu


# ----------------------------- shared helpers ------------------------------

def _layernorm(x, gamma, beta, eps=1e-5):
    # PyTorch nn.LayerNorm: biased variance, eps inside sqrt.
    mu = jnp.mean(x, axis=-1, keepdims=True)
    var = jnp.mean((x - mu) ** 2, axis=-1, keepdims=True)
    return (x - mu) * jax.lax.rsqrt(var + eps) * gamma + beta


def positional_encoding(B, L, D):
    l = jnp.arange(L, dtype=jnp.float32)[:, None]
    d = jnp.arange(D, dtype=jnp.float32)[None, :]
    i_pairs = jnp.floor(d / 2.0)
    i_alt = d - 2.0 * i_pairs
    phase = l / (10000.0 ** (i_pairs / D)) + (math.pi / 2.0) * i_alt
    pe = jnp.sin(phase)
    return jnp.broadcast_to(pe[None], (B, L, D))


def _pick_vmem_limit():
    """~80% of the chip's physical VMEM (don't cap at the 16/32 MiB scoped
    default on v5e/v6e; stays well under 64 MiB on v7x)."""
    cap = 64 * 1024 * 1024
    try:
        info = pltpu.get_tpu_info()
        cap = int(getattr(info, "vmem_capacity_bytes", cap))
    except Exception:
        pass
    return max(32 * 1024 * 1024, int(cap * 0.8))


def _pick_chunking(B, Ls):
    """Smallest #sequences per chunk with a sublane-aligned row count."""
    for spc in range(1, B + 1):
        if B % spc == 0 and (spc * Ls) % 8 == 0:
            return spc
    return B   # single chunk: block equals the full array dim, always legal


# ------------------------------ Pallas kernel -------------------------------

def _encoder_stack_kernel(x_hbm, bias_ref, wqkv_ref, wo_ref, w1_ref, w2_ref,
                          vdm_ref, b1_ref, out_ref, seed_sem, *, H, dk):
    Nc, Dm = out_ref.shape
    chunk = pl.program_id(0)
    layer = pl.program_id(1)

    # Layer 0 of each chunk: seed the resident residual stream straight from
    # HBM (the embedding slab never occupies a long-lived VMEM input block).
    @pl.when(layer == 0)
    def _seed():
        cp = pltpu.make_async_copy(x_hbm.at[chunk], out_ref, seed_sem)
        cp.start()
        cp.wait()

    x = out_ref[...]                                    # [Nc, Dm] f32 residual
    xb = x.astype(jnp.bfloat16)

    # ---- fused QKV projection: one [Nc, Dm] x [Dm, 3Dm] MXU matmul ---------
    # (1/sqrt(dk) is already folded into the Wq third of wqkv at init time.)
    qkv = jnp.dot(xb, wqkv_ref[0], preferred_element_type=jnp.float32)  # [Nc, 3Dm]

    # ---- head split: [Nc, Dm] -> [H, Nc, dk] via static lane slices --------
    qh = jnp.stack([qkv[:, 0 * Dm + h * dk: 0 * Dm + (h + 1) * dk]
                    for h in range(H)], axis=0).astype(jnp.bfloat16)
    kh = jnp.stack([qkv[:, 1 * Dm + h * dk: 1 * Dm + (h + 1) * dk]
                    for h in range(H)], axis=0).astype(jnp.bfloat16)
    vh = jnp.stack([qkv[:, 2 * Dm + h * dk: 2 * Dm + (h + 1) * dk]
                    for h in range(H)], axis=0).astype(jnp.bfloat16)

    # ---- head-batched scores (contract over dk) + precomputed f32 bias -----
    s = jnp.einsum("hqd,hkd->hqk", qh, kh,
                   preferred_element_type=jnp.float32)          # [H, Nc, Nc]
    s = s + bias_ref[...]                                        # [1, Nc, Nc] f32

    # softmax over keys (f32); finite -1e30 bias keeps this NaN-safe
    m = jnp.max(s, axis=-1, keepdims=True)
    e = jnp.exp(s - m)
    p = e * pl.reciprocal(jnp.sum(e, axis=-1, keepdims=True), approx=True)
    # TODO(synk): on v6e/v7x the exp/multiply could run in bf16 (f32 sum) for a
    # small VPU/EUP saving; kept f32 here for accuracy on all generations.

    # ---- weighted values; heads recombined on the lane dim ------------------
    o = jnp.einsum("hqk,hkd->hqd", p.astype(jnp.bfloat16), vh,
                   preferred_element_type=jnp.float32)          # [H, Nc, dk]
    heads = jnp.concatenate([o[h] for h in range(H)], axis=1)   # [Nc, Dm]

    # ---- output projection + residual + LN1 --------------------------------
    z1 = jnp.dot(heads.astype(jnp.bfloat16), wo_ref[0],
                 preferred_element_type=jnp.float32)
    vdm = vdm_ref[0]                                    # [5, Dm]: g1,be1,g2,be2,b2
    a1 = _layernorm(z1 + x, vdm[0:1], vdm[1:2])

    # ---- feed-forward + residual + LN2 --------------------------------------
    h1 = jnp.dot(a1.astype(jnp.bfloat16), w1_ref[0],
                 preferred_element_type=jnp.float32) + b1_ref[0]
    h1 = jnp.maximum(h1, 0.0)
    z2 = jnp.dot(h1.astype(jnp.bfloat16), w2_ref[0],
                 preferred_element_type=jnp.float32) + vdm[4:5]
    out_ref[...] = _layernorm(z2 + a1, vdm[2:3], vdm[3:4])


# ------------------------------ pallas wrapper ------------------------------

def encoder_forward_pallas(source, src_mask, emb_table, params):
    B, Ls = source.shape
    Dm = emb_table.shape[1]
    H = params["n_heads"]
    dk = Dm // H
    Lb = params["wqkv"].shape[0]
    Dff = params["w1"].shape[2]
    N = B * Ls

    spc = _pick_chunking(B, Ls)            # sequences per chunk
    n_chunks = B // spc
    Nc = spc * Ls                          # rows per chunk

    # embedding + positional encoding (dropout = identity), chunked [C, Nc, Dm]
    x = (jnp.take(emb_table, source, axis=0)
         + positional_encoding(B, Ls, Dm)).astype(jnp.float32)
    x = x.reshape(n_chunks, Nc, Dm)

    # Combined additive attention bias, built ONCE (hoisted out of the layer
    # loop): block-diagonal cross-sequence mask + key-padding mask, per chunk.
    rowb = jnp.arange(Nc, dtype=jnp.int32)[:, None] // Ls
    colb = jnp.arange(Nc, dtype=jnp.int32)[None, :] // Ls
    block_bias = jnp.where(rowb == colb, 0.0, -1e30).astype(jnp.float32)  # [Nc,Nc]
    key_bias = jnp.where(src_mask, -1e30, 0.0).astype(jnp.float32)
    key_bias = key_bias.reshape(n_chunks, 1, Nc)
    bias = block_bias[None, :, :] + key_bias                              # [C,Nc,Nc]

    kernel = functools.partial(_encoder_stack_kernel, H=H, dk=dk)

    per_layer = lambda shape: pl.BlockSpec(shape, lambda c, l: (l, 0, 0))

    out = pl.pallas_call(
        kernel,
        grid=(n_chunks, Lb),
        in_specs=[
            pl.BlockSpec(memory_space=pl.ANY),                   # x: stays in HBM
            pl.BlockSpec((1, Nc, Nc), lambda c, l: (c, 0, 0)),   # attention bias
            per_layer((1, Dm, 3 * Dm)),                          # fused Wq|Wk|Wv
            per_layer((1, Dm, Dm)),                              # Wo
            per_layer((1, Dm, Dff)),                             # W1
            per_layer((1, Dff, Dm)),                             # W2
            per_layer((1, 5, Dm)),                               # g1,be1,g2,be2,b2
            per_layer((1, 1, Dff)),                              # b1
        ],
        out_specs=pl.BlockSpec((Nc, Dm), lambda c, l: (c, 0)),   # resident/layer
        out_shape=jax.ShapeDtypeStruct((N, Dm), jnp.float32),
        scratch_shapes=[pltpu.SemaphoreType.DMA],
        compiler_params=pltpu.CompilerParams(
            dimension_semantics=("parallel", "arbitrary"),
            vmem_limit_bytes=_pick_vmem_limit()),
    )(x, bias, params["wqkv"], params["wo"], params["w1"], params["w2"],
      params["vecs_dm"], params["b1"])

    return out.reshape(B, Ls, Dm)


# ------------------------------ parameter init ------------------------------

def init_encoder_params(key, n_blocks, d_model, d_ff, n_heads):
    kq, kk, kv, ko, k1, k2, kg = jax.random.split(key, 7)
    s_m = 1.0 / math.sqrt(d_model)
    s_f = 1.0 / math.sqrt(d_ff)
    mm = (n_blocks, d_model, d_model)
    wq = jax.random.normal(kq, mm, jnp.float32) * s_m
    wk = jax.random.normal(kk, mm, jnp.float32) * s_m
    wv = jax.random.normal(kv, mm, jnp.float32) * s_m
    wo = jax.random.normal(ko, mm, jnp.float32) * s_m
    w1 = jax.random.normal(k1, (n_blocks, d_model, d_ff), jnp.float32) * s_m
    w2 = jax.random.normal(k2, (n_blocks, d_ff, d_model), jnp.float32) * s_f

    # Fold the attention scale 1/sqrt(dk) into Wq (one-time reparametrization;
    # both the kernel and the reference consume the same pre-scaled weight).
    wq = wq * (1.0 / math.sqrt(d_model // n_heads))

    gk = jax.random.split(kg, 6)
    g1 = 1.0 + 0.1 * jax.random.normal(gk[0], (n_blocks, d_model), jnp.float32)
    be1 = 0.1 * jax.random.normal(gk[1], (n_blocks, d_model), jnp.float32)
    g2 = 1.0 + 0.1 * jax.random.normal(gk[2], (n_blocks, d_model), jnp.float32)
    be2 = 0.1 * jax.random.normal(gk[3], (n_blocks, d_model), jnp.float32)
    b2 = 0.1 * jax.random.normal(gk[4], (n_blocks, d_model), jnp.float32)
    b1 = 0.1 * jax.random.normal(gk[5], (n_blocks, 1, d_ff), jnp.float32)

    return {
        "n_heads": n_heads,
        # weights stored bf16 (MXU inputs); the reference upcasts the same
        # bf16 values to f32, so both paths see identical parameters.
        "wqkv": jnp.concatenate([wq, wk, wv], axis=2).astype(jnp.bfloat16),
        "wo": wo.astype(jnp.bfloat16),
        "w1": w1.astype(jnp.bfloat16),
        "w2": w2.astype(jnp.bfloat16),
        "vecs_dm": jnp.stack([g1, be1, g2, be2, b2], axis=1),  # [L, 5, Dm] f32
        "b1": b1,                                              # [L, 1, Dff] f32
    }


# --------------------------- pure-JAX reference ------------------------------

def encoder_forward_ref(source, src_mask, emb_table, params):
    B, Ls = source.shape
    Dm = emb_table.shape[1]
    H = params["n_heads"]
    dk = Dm // H
    hp = jax.lax.Precision.HIGHEST

    mask3d = jnp.broadcast_to(src_mask[:, None, :], (B, Ls, Ls))
    h = jnp.take(emb_table, source, axis=0) + positional_encoding(B, Ls, Dm)
    n_blocks = params["wqkv"].shape[0]

    for l in range(n_blocks):
        wqkv = params["wqkv"][l].astype(jnp.float32)
        wq, wk, wv = wqkv[:, :Dm], wqkv[:, Dm:2 * Dm], wqkv[:, 2 * Dm:]
        wo = params["wo"][l].astype(jnp.float32)
        w1 = params["w1"][l].astype(jnp.float32)
        w2 = params["w2"][l].astype(jnp.float32)
        g1, be1, g2, be2, b2 = [params["vecs_dm"][l, i] for i in range(5)]
        b1 = params["b1"][l, 0]

        q = jnp.einsum("bld,de->ble", h, wq, precision=hp).reshape(B, Ls, H, dk)
        k = jnp.einsum("bld,de->ble", h, wk, precision=hp).reshape(B, Ls, H, dk)
        v = jnp.einsum("bld,de->ble", h, wv, precision=hp).reshape(B, Ls, H, dk)
        # NOTE: the 1/sqrt(dk) attention scale is folded into the stored Wq,
        # so scores are already scaled (same math as the PyTorch module).
        s = jnp.einsum("bqhd,bkhd->bhqk", q, k, precision=hp)
        s = jnp.where(mask3d[:, None], -jnp.inf, s)
        w = jax.nn.softmax(s, axis=-1)
        o = jnp.einsum("bhqk,bkhd->bqhd", w, v, precision=hp).reshape(B, Ls, Dm)
        z1 = jnp.einsum("bld,de->ble", o, wo, precision=hp)
        a1 = _layernorm(z1 + h, g1, be1)
        h1 = jnp.maximum(jnp.einsum("bld,df->blf", a1, w1, precision=hp) + b1, 0.0)
        z2 = jnp.einsum("blf,fd->bld", h1, w2, precision=hp) + b2
        h = _layernorm(z2 + a1, g2, be2)
    return h


# --------------------------------- main --------------------------------------

if __name__ == "__main__":
    # Small but layout-friendly shapes: Dm multiple of 128, dk = 16, N mult of 8.
    B, Ls, Dm, H, Dff, Vs, n_blocks = 2, 8, 128, 8, 256, 50, 2

    key = jax.random.PRNGKey(0)
    k_emb, k_src, k_msk, k_par = jax.random.split(key, 4)

    emb_table = jax.random.normal(k_emb, (Vs, Dm), jnp.float32)
    source = jax.random.randint(k_src, (B, Ls), 0, Vs, dtype=jnp.int32)
    src_mask = jax.random.bernoulli(k_msk, 0.3, (B, Ls))
    # Fully-masked rows: PyTorch softmax gives NaN, the kernel gives a finite
    # uniform distribution (additive -1e30 bias); keep >=1 unmasked key/seq.
    src_mask = src_mask.at[:, 0].set(False)

    params = init_encoder_params(k_par, n_blocks, Dm, Dff, H)

    out = jax.block_until_ready(
        encoder_forward_pallas(source, src_mask, emb_table, params))
    ref = jax.block_until_ready(
        encoder_forward_ref(source, src_mask, emb_table, params))

    # tolerance accounts for bf16 MXU inputs (f32 accumulation / softmax / LN)
    # and the approximate softmax reciprocal.
    np.testing.assert_allclose(np.asarray(out), np.asarray(ref),
                               atol=4e-2, rtol=4e-2)

    print("KERNEL_OK")
</pallas_src>

<mosaic_0001>
module attributes {stable_mosaic.version = 11 : i64} {
  func.func @_encoder_stack_kernel(%arg0: i32, %arg1: i32, %arg2: memref<2x8x128xf32, #tpu.memory_space<any>>, %arg3: memref<1x8x8xf32, #tpu.memory_space<vmem>>, %arg4: memref<1x128x384xbf16, #tpu.memory_space<vmem>>, %arg5: memref<1x128x128xbf16, #tpu.memory_space<vmem>>, %arg6: memref<1x128x256xbf16, #tpu.memory_space<vmem>>, %arg7: memref<1x256x128xbf16, #tpu.memory_space<vmem>>, %arg8: memref<1x5x128xf32, #tpu.memory_space<vmem>>, %arg9: memref<1x1x256xf32, #tpu.memory_space<vmem>>, %arg10: memref<8x128xf32, #tpu.memory_space<vmem>>, %arg11: memref<!tpu.dma_semaphore, #tpu.memory_space<semaphore_mem>>) attributes {dimension_semantics = [#tpu.dimension_semantics<parallel>, #tpu.dimension_semantics<arbitrary>], iteration_bounds = array<i64: 2, 2>, scalar_prefetch = 0 : i64, scratch_operands = 1 : i64, tpu.core_type = #tpu.core_type<tc>, window_params = [{}, {transform_indices = @transform_1, window_bounds = array<i64: 1, 8, 8>}, {transform_indices = @transform_2, window_bounds = array<i64: 1, 128, 384>}, {transform_indices = @transform_3, window_bounds = array<i64: 1, 128, 128>}, {transform_indices = @transform_4, window_bounds = array<i64: 1, 128, 256>}, {transform_indices = @transform_5, window_bounds = array<i64: 1, 256, 128>}, {transform_indices = @transform_6, window_bounds = array<i64: 1, 5, 128>}, {transform_indices = @transform_7, window_bounds = array<i64: 1, 1, 256>}, {transform_indices = @transform_8, window_bounds = array<i64: 8, 128>}]} {
    %c0_i32 = arith.constant 0 : i32
    %0 = arith.cmpi eq, %arg1, %c0_i32 : i32
    %1 = arith.extui %0 : i1 to i32
    %c0_i32_0 = arith.constant 0 : i32
    %2 = arith.cmpi ne, %1, %c0_i32_0 : i32
    scf.if %2 {
      %c0_i32_43 = arith.constant 0 : i32
      %c0_i32_44 = arith.constant 0 : i32
      %169 = tpu.memref_slice %arg2[%arg0, %c0_i32_43, %c0_i32_44] : memref<2x8x128xf32, #tpu.memory_space<any>> -> memref<1x8x128xf32, #tpu.memory_space<any>>
      %170 = tpu.memref_squeeze %169 : memref<1x8x128xf32, #tpu.memory_space<any>> -> memref<8x128xf32, #tpu.memory_space<any>>
      tpu.enqueue_dma source(%170 : memref<8x128xf32, #tpu.memory_space<any>>) target(%arg10 : memref<8x128xf32, #tpu.memory_space<vmem>>) target_semaphore(%arg11 : memref<!tpu.dma_semaphore, #tpu.memory_space<semaphore_mem>>)
      %c0_i32_45 = arith.constant 0 : i32
      %c0_i32_46 = arith.constant 0 : i32
      %171 = tpu.memref_slice %arg2[%arg0, %c0_i32_45, %c0_i32_46] : memref<2x8x128xf32, #tpu.memory_space<any>> -> memref<1x8x128xf32, #tpu.memory_space<any>>
      %172 = tpu.memref_squeeze %171 : memref<1x8x128xf32, #tpu.memory_space<any>> -> memref<8x128xf32, #tpu.memory_space<any>>
      tpu.wait_dma2 semaphore(%arg11 : memref<!tpu.dma_semaphore, #tpu.memory_space<semaphore_mem>>) src(%172 : memref<8x128xf32, #tpu.memory_space<any>>) dst(%arg10 : memref<8x128xf32, #tpu.memory_space<vmem>>)
    } else {
    }
    %c0 = arith.constant 0 : index
    %c0_1 = arith.constant 0 : index
    %3 = vector.load %arg10[%c0, %c0_1] : memref<8x128xf32, #tpu.memory_space<vmem>>, vector<8x128xf32>
    %4 = arith.truncf %3 : vector<8x128xf32> to vector<8x128xbf16>
    %c0_2 = arith.constant 0 : index
    %c0_3 = arith.constant 0 : index
    %c0_4 = arith.constant 0 : index
    %5 = vector.load %arg4[%c0_2, %c0_3, %c0_4] : memref<1x128x384xbf16, #tpu.memory_space<vmem>>, vector<1x128x384xbf16>
    %6 = vector.shape_cast %5 : vector<1x128x384xbf16> to vector<128x384xbf16>
    %cst = arith.constant dense<0.000000e+00> : vector<8x384xf32>
    %7 = tpu.matmul %4, %6, %cst {dimension_numbers = #tpu.dot_dimension_numbers<[1], [0], [0], [1], [0, 0, 1, 1], [], []>} : vector<8x128xbf16>, vector<128x384xbf16>, vector<8x384xf32> -> vector<8x384xf32>
    %8 = vector.extract_strided_slice %7 {offsets = [0, 0], sizes = [8, 16], strides = [1, 1]} : vector<8x384xf32> to vector<8x16xf32>
    %9 = vector.extract_strided_slice %7 {offsets = [0, 16], sizes = [8, 16], strides = [1, 1]} : vector<8x384xf32> to vector<8x16xf32>
    %10 = vector.extract_strided_slice %7 {offsets = [0, 32], sizes = [8, 16], strides = [1, 1]} : vector<8x384xf32> to vector<8x16xf32>
    %11 = vector.extract_strided_slice %7 {offsets = [0, 48], sizes = [8, 16], strides = [1, 1]} : vector<8x384xf32> to vector<8x16xf32>
    %12 = vector.extract_strided_slice %7 {offsets = [0, 64], sizes = [8, 16], strides = [1, 1]} : vector<8x384xf32> to vector<8x16xf32>
    %13 = vector.extract_strided_slice %7 {offsets = [0, 80], sizes = [8, 16], strides = [1, 1]} : vector<8x384xf32> to vector<8x16xf32>
    %14 = vector.extract_strided_slice %7 {offsets = [0, 96], sizes = [8, 16], strides = [1, 1]} : vector<8x384xf32> to vector<8x16xf32>
    %15 = vector.extract_strided_slice %7 {offsets = [0, 112], sizes = [8, 16], strides = [1, 1]} : vector<8x384xf32> to vector<8x16xf32>
    %16 = vector.shape_cast %8 : vector<8x16xf32> to vector<1x8x16xf32>
    %17 = vector.shape_cast %9 : vector<8x16xf32> to vector<1x8x16xf32>
    %18 = vector.shape_cast %10 : vector<8x16xf32> to vector<1x8x16xf32>
    %19 = vector.shape_cast %11 : vector<8x16xf32> to vector<1x8x16xf32>
    %20 = vector.shape_cast %12 : vector<8x16xf32> to vector<1x8x16xf32>
    %21 = vector.shape_cast %13 : vector<8x16xf32> to vector<1x8x16xf32>
    %22 = vector.shape_cast %14 : vector<8x16xf32> to vector<1x8x16xf32>
    %23 = vector.shape_cast %15 : vector<8x16xf32> to vector<1x8x16xf32>
    %24 = tpu.concatenate %16, %17, %18, %19, %20, %21, %22, %23 in 0 : vector<1x8x16xf32>, vector<1x8x16xf32>, vector<1x8x16xf32>, vector<1x8x16xf32>, vector<1x8x16xf32>, vector<1x8x16xf32>, vector<1x8x16xf32>, vector<1x8x16xf32> -> vector<8x8x16xf32>
    %25 = arith.truncf %24 : vector<8x8x16xf32> to vector<8x8x16xbf16>
    %26 = vector.extract_strided_slice %7 {offsets = [0, 128], sizes = [8, 16], strides = [1, 1]} : vector<8x384xf32> to vector<8x16xf32>
    %27 = vector.extract_strided_slice %7 {offsets = [0, 144], sizes = [8, 16], strides = [1, 1]} : vector<8x384xf32> to vector<8x16xf32>
    %28 = vector.extract_strided_slice %7 {offsets = [0, 160], sizes = [8, 16], strides = [1, 1]} : vector<8x384xf32> to vector<8x16xf32>
    %29 = vector.extract_strided_slice %7 {offsets = [0, 176], sizes = [8, 16], strides = [1, 1]} : vector<8x384xf32> to vector<8x16xf32>
    %30 = vector.extract_strided_slice %7 {offsets = [0, 192], sizes = [8, 16], strides = [1, 1]} : vector<8x384xf32> to vector<8x16xf32>
    %31 = vector.extract_strided_slice %7 {offsets = [0, 208], sizes = [8, 16], strides = [1, 1]} : vector<8x384xf32> to vector<8x16xf32>
    %32 = vector.extract_strided_slice %7 {offsets = [0, 224], sizes = [8, 16], strides = [1, 1]} : vector<8x384xf32> to vector<8x16xf32>
    %33 = vector.extract_strided_slice %7 {offsets = [0, 240], sizes = [8, 16], strides = [1, 1]} : vector<8x384xf32> to vector<8x16xf32>
    %34 = vector.shape_cast %26 : vector<8x16xf32> to vector<1x8x16xf32>
    %35 = vector.shape_cast %27 : vector<8x16xf32> to vector<1x8x16xf32>
    %36 = vector.shape_cast %28 : vector<8x16xf32> to vector<1x8x16xf32>
    %37 = vector.shape_cast %29 : vector<8x16xf32> to vector<1x8x16xf32>
    %38 = vector.shape_cast %30 : vector<8x16xf32> to vector<1x8x16xf32>
    %39 = vector.shape_cast %31 : vector<8x16xf32> to vector<1x8x16xf32>
    %40 = vector.shape_cast %32 : vector<8x16xf32> to vector<1x8x16xf32>
    %41 = vector.shape_cast %33 : vector<8x16xf32> to vector<1x8x16xf32>
    %42 = tpu.concatenate %34, %35, %36, %37, %38, %39, %40, %41 in 0 : vector<1x8x16xf32>, vector<1x8x16xf32>, vector<1x8x16xf32>, vector<1x8x16xf32>, vector<1x8x16xf32>, vector<1x8x16xf32>, vector<1x8x16xf32>, vector<1x8x16xf32> -> vector<8x8x16xf32>
    %43 = arith.truncf %42 : vector<8x8x16xf32> to vector<8x8x16xbf16>
    %44 = vector.extract_strided_slice %7 {offsets = [0, 256], sizes = [8, 16], strides = [1, 1]} : vector<8x384xf32> to vector<8x16xf32>
    %45 = vector.extract_strided_slice %7 {offsets = [0, 272], sizes = [8, 16], strides = [1, 1]} : vector<8x384xf32> to vector<8x16xf32>
    %46 = vector.extract_strided_slice %7 {offsets = [0, 288], sizes = [8, 16], strides = [1, 1]} : vector<8x384xf32> to vector<8x16xf32>
    %47 = vector.extract_strided_slice %7 {offsets = [0, 304], sizes = [8, 16], strides = [1, 1]} : vector<8x384xf32> to vector<8x16xf32>
    %48 = vector.extract_strided_slice %7 {offsets = [0, 320], sizes = [8, 16], strides = [1, 1]} : vector<8x384xf32> to vector<8x16xf32>
    %49 = vector.extract_strided_slice %7 {offsets = [0, 336], sizes = [8, 16], strides = [1, 1]} : vector<8x384xf32> to vector<8x16xf32>
    %50 = vector.extract_strided_slice %7 {offsets = [0, 352], sizes = [8, 16], strides = [1, 1]} : vector<8x384xf32> to vector<8x16xf32>
    %51 = vector.extract_strided_slice %7 {offsets = [0, 368], sizes = [8, 16], strides = [1, 1]} : vector<8x384xf32> to vector<8x16xf32>
    %52 = vector.shape_cast %44 : vector<8x16xf32> to vector<1x8x16xf32>
    %53 = vector.shape_cast %45 : vector<8x16xf32> to vector<1x8x16xf32>
    %54 = vector.shape_cast %46 : vector<8x16xf32> to vector<1x8x16xf32>
    %55 = vector.shape_cast %47 : vector<8x16xf32> to vector<1x8x16xf32>
    %56 = vector.shape_cast %48 : vector<8x16xf32> to vector<1x8x16xf32>
    %57 = vector.shape_cast %49 : vector<8x16xf32> to vector<1x8x16xf32>
    %58 = vector.shape_cast %50 : vector<8x16xf32> to vector<1x8x16xf32>
    %59 = vector.shape_cast %51 : vector<8x16xf32> to vector<1x8x16xf32>
    %60 = tpu.concatenate %52, %53, %54, %55, %56, %57, %58, %59 in 0 : vector<1x8x16xf32>, vector<1x8x16xf32>, vector<1x8x16xf32>, vector<1x8x16xf32>, vector<1x8x16xf32>, vector<1x8x16xf32>, vector<1x8x16xf32>, vector<1x8x16xf32> -> vector<8x8x16xf32>
    %61 = arith.truncf %60 : vector<8x8x16xf32> to vector<8x8x16xbf16>
    "tpu.trace_start"() <{level = 10 : i32, message = "hqd,hkd->hqk"}> : () -> ()
    %cst_5 = arith.constant dense<0.000000e+00> : vector<8x8x8xf32>
    %62 = tpu.matmul %25, %43, %cst_5 {dimension_numbers = #tpu.dot_dimension_numbers<[2], [2], [1], [1], [0, 0, 0, 1, 1, 1], [0], [0]>} : vector<8x8x16xbf16>, vector<8x8x16xbf16>, vector<8x8x8xf32> -> vector<8x8x8xf32>
    "tpu.trace_stop"() : () -> ()
    %c0_6 = arith.constant 0 : index
    %c0_7 = arith.constant 0 : index
    %c0_8 = arith.constant 0 : index
    %63 = vector.load %arg3[%c0_6, %c0_7, %c0_8] : memref<1x8x8xf32, #tpu.memory_space<vmem>>, vector<1x8x8xf32>
    %64 = vector.broadcast %63 : vector<1x8x8xf32> to vector<8x8x8xf32>
    %65 = arith.addf %62, %64 : vector<8x8x8xf32>
    %cst_9 = arith.constant dense<0xFF800000> : vector<8x8xf32>
    %66 = vector.multi_reduction <maximumf>, %65, %cst_9 [2] : vector<8x8x8xf32> to vector<8x8xf32>
    %67 = vector.shape_cast %66 : vector<8x8xf32> to vector<8x8x1xf32>
    %68 = vector.broadcast %67 : vector<8x8x1xf32> to vector<8x8x8xf32>
    %69 = arith.subf %65, %68 : vector<8x8x8xf32>
    %70 = math.exp %69 : vector<8x8x8xf32>
    %cst_10 = arith.constant dense<0.000000e+00> : vector<8x8xf32>
    %71 = vector.multi_reduction <add>, %70, %cst_10 [2] : vector<8x8x8xf32> to vector<8x8xf32>
    %72 = vector.shape_cast %71 : vector<8x8xf32> to vector<8x8x1xf32>
    %73 = tpu.reciprocal %72 {approx = true} : vector<8x8x1xf32> -> vector<8x8x1xf32>
    %74 = vector.broadcast %73 : vector<8x8x1xf32> to vector<8x8x8xf32>
    %75 = arith.mulf %70, %74 : vector<8x8x8xf32>
    %76 = arith.truncf %75 : vector<8x8x8xf32> to vector<8x8x8xbf16>
    "tpu.trace_start"() <{level = 10 : i32, message = "hqk,hkd->hqd"}> : () -> ()
    %cst_11 = arith.constant dense<0.000000e+00> : vector<8x8x16xf32>
    %77 = tpu.matmul %76, %61, %cst_11 {dimension_numbers = #tpu.dot_dimension_numbers<[2], [1], [1], [2], [0, 0, 0, 1, 1, 2], [0], [0]>} : vector<8x8x8xbf16>, vector<8x8x16xbf16>, vector<8x8x16xf32> -> vector<8x8x16xf32>
    "tpu.trace_stop"() : () -> ()
    %78 = vector.extract_strided_slice %77 {offsets = [0, 0, 0], sizes = [1, 8, 16], strides = [1, 1, 1]} : vector<8x8x16xf32> to vector<1x8x16xf32>
    %79 = vector.shape_cast %78 : vector<1x8x16xf32> to vector<8x16xf32>
    %80 = vector.extract_strided_slice %77 {offsets = [1, 0, 0], sizes = [1, 8, 16], strides = [1, 1, 1]} : vector<8x8x16xf32> to vector<1x8x16xf32>
    %81 = vector.shape_cast %80 : vector<1x8x16xf32> to vector<8x16xf32>
    %82 = vector.extract_strided_slice %77 {offsets = [2, 0, 0], sizes = [1, 8, 16], strides = [1, 1, 1]} : vector<8x8x16xf32> to vector<1x8x16xf32>
    %83 = vector.shape_cast %82 : vector<1x8x16xf32> to vector<8x16xf32>
    %84 = vector.extract_strided_slice %77 {offsets = [3, 0, 0], sizes = [1, 8, 16], strides = [1, 1, 1]} : vector<8x8x16xf32> to vector<1x8x16xf32>
    %85 = vector.shape_cast %84 : vector<1x8x16xf32> to vector<8x16xf32>
    %86 = vector.extract_strided_slice %77 {offsets = [4, 0, 0], sizes = [1, 8, 16], strides = [1, 1, 1]} : vector<8x8x16xf32> to vector<1x8x16xf32>
    %87 = vector.shape_cast %86 : vector<1x8x16xf32> to vector<8x16xf32>
    %88 = vector.extract_strided_slice %77 {offsets = [5, 0, 0], sizes = [1, 8, 16], strides = [1, 1, 1]} : vector<8x8x16xf32> to vector<1x8x16xf32>
    %89 = vector.shape_cast %88 : vector<1x8x16xf32> to vector<8x16xf32>
    %90 = vector.extract_strided_slice %77 {offsets = [6, 0, 0], sizes = [1, 8, 16], strides = [1, 1, 1]} : vector<8x8x16xf32> to vector<1x8x16xf32>
    %91 = vector.shape_cast %90 : vector<1x8x16xf32> to vector<8x16xf32>
    %92 = vector.extract_strided_slice %77 {offsets = [7, 0, 0], sizes = [1, 8, 16], strides = [1, 1, 1]} : vector<8x8x16xf32> to vector<1x8x16xf32>
    %93 = vector.shape_cast %92 : vector<1x8x16xf32> to vector<8x16xf32>
    %94 = tpu.concatenate %79, %81, %83, %85, %87, %89, %91, %93 in 1 : vector<8x16xf32>, vector<8x16xf32>, vector<8x16xf32>, vector<8x16xf32>, vector<8x16xf32>, vector<8x16xf32>, vector<8x16xf32>, vector<8x16xf32> -> vector<8x128xf32>
    %95 = arith.truncf %94 : vector<8x128xf32> to vector<8x128xbf16>
    %c0_12 = arith.constant 0 : index
    %c0_13 = arith.constant 0 : index
    %c0_14 = arith.constant 0 : index
    %96 = vector.load %arg5[%c0_12, %c0_13, %c0_14] : memref<1x128x128xbf16, #tpu.memory_space<vmem>>, vector<1x128x128xbf16>
    %97 = vector.shape_cast %96 : vector<1x128x128xbf16> to vector<128x128xbf16>
    %cst_15 = arith.constant dense<0.000000e+00> : vector<8x128xf32>
    %98 = tpu.matmul %95, %97, %cst_15 {dimension_numbers = #tpu.dot_dimension_numbers<[1], [0], [0], [1], [0, 0, 1, 1], [], []>} : vector<8x128xbf16>, vector<128x128xbf16>, vector<8x128xf32> -> vector<8x128xf32>
    %c0_16 = arith.constant 0 : index
    %c0_17 = arith.constant 0 : index
    %c0_18 = arith.constant 0 : index
    %99 = vector.load %arg8[%c0_16, %c0_17, %c0_18] : memref<1x5x128xf32, #tpu.memory_space<vmem>>, vector<1x5x128xf32>
    %100 = vector.shape_cast %99 : vector<1x5x128xf32> to vector<5x128xf32>
    %101 = arith.addf %98, %3 : vector<8x128xf32>
    %102 = vector.extract_strided_slice %100 {offsets = [0, 0], sizes = [1, 128], strides = [1, 1]} : vector<5x128xf32> to vector<1x128xf32>
    %103 = vector.extract_strided_slice %100 {offsets = [1, 0], sizes = [1, 128], strides = [1, 1]} : vector<5x128xf32> to vector<1x128xf32>
    %cst_19 = arith.constant dense<0.000000e+00> : vector<8xf32>
    %104 = vector.multi_reduction <add>, %101, %cst_19 [1] : vector<8x128xf32> to vector<8xf32>
    %105 = vector.shape_cast %104 : vector<8xf32> to vector<8x1xf32>
    %cst_20 = arith.constant 1.280000e+02 : f32
    %106 = vector.broadcast %cst_20 : f32 to vector<8x1xf32>
    %107 = arith.divf %105, %106 : vector<8x1xf32>
    %108 = vector.broadcast %107 : vector<8x1xf32> to vector<8x128xf32>
    %109 = arith.subf %101, %108 : vector<8x128xf32>
    %110 = arith.mulf %109, %109 : vector<8x128xf32>
    %cst_21 = arith.constant dense<0.000000e+00> : vector<8xf32>
    %111 = vector.multi_reduction <add>, %110, %cst_21 [1] : vector<8x128xf32> to vector<8xf32>
    %112 = vector.shape_cast %111 : vector<8xf32> to vector<8x1xf32>
    %cst_22 = arith.constant 1.280000e+02 : f32
    %113 = vector.broadcast %cst_22 : f32 to vector<8x1xf32>
    %114 = arith.divf %112, %113 : vector<8x1xf32>
    %115 = vector.broadcast %107 : vector<8x1xf32> to vector<8x128xf32>
    %116 = arith.subf %101, %115 : vector<8x128xf32>
    %cst_23 = arith.constant 9.99999974E-6 : f32
    %117 = vector.broadcast %cst_23 : f32 to vector<8x1xf32>
    %118 = arith.addf %114, %117 : vector<8x1xf32>
    %119 = math.rsqrt %118 : vector<8x1xf32>
    %120 = vector.broadcast %119 : vector<8x1xf32> to vector<8x128xf32>
    %121 = arith.mulf %116, %120 : vector<8x128xf32>
    %122 = vector.broadcast %102 : vector<1x128xf32> to vector<8x128xf32>
    %123 = arith.mulf %121, %122 : vector<8x128xf32>
    %124 = vector.broadcast %103 : vector<1x128xf32> to vector<8x128xf32>
    %125 = arith.addf %123, %124 : vector<8x128xf32>
    %126 = arith.truncf %125 : vector<8x128xf32> to vector<8x128xbf16>
    %c0_24 = arith.constant 0 : index
    %c0_25 = arith.constant 0 : index
    %c0_26 = arith.constant 0 : index
    %127 = vector.load %arg6[%c0_24, %c0_25, %c0_26] : memref<1x128x256xbf16, #tpu.memory_space<vmem>>, vector<1x128x256xbf16>
    %128 = vector.shape_cast %127 : vector<1x128x256xbf16> to vector<128x256xbf16>
    %cst_27 = arith.constant dense<0.000000e+00> : vector<8x256xf32>
    %129 = tpu.matmul %126, %128, %cst_27 {dimension_numbers = #tpu.dot_dimension_numbers<[1], [0], [0], [1], [0, 0, 1, 1], [], []>} : vector<8x128xbf16>, vector<128x256xbf16>, vector<8x256xf32> -> vector<8x256xf32>
    %c0_28 = arith.constant 0 : index
    %c0_29 = arith.constant 0 : index
    %c0_30 = arith.constant 0 : index
    %130 = vector.load %arg9[%c0_28, %c0_29, %c0_30] : memref<1x1x256xf32, #tpu.memory_space<vmem>>, vector<1x1x256xf32>
    %131 = vector.shape_cast %130 : vector<1x1x256xf32> to vector<1x256xf32>
    %132 = vector.broadcast %131 : vector<1x256xf32> to vector<8x256xf32>
    %133 = arith.addf %129, %132 : vector<8x256xf32>
    %cst_31 = arith.constant 0.000000e+00 : f32
    %134 = vector.broadcast %cst_31 : f32 to vector<8x256xf32>
    %135 = arith.maximumf %133, %134 : vector<8x256xf32>
    %136 = arith.truncf %135 : vector<8x256xf32> to vector<8x256xbf16>
    %c0_32 = arith.constant 0 : index
    %c0_33 = arith.constant 0 : index
    %c0_34 = arith.constant 0 : index
    %137 = vector.load %arg7[%c0_32, %c0_33, %c0_34] : memref<1x256x128xbf16, #tpu.memory_space<vmem>>, vector<1x256x128xbf16>
    %138 = vector.shape_cast %137 : vector<1x256x128xbf16> to vector<256x128xbf16>
    %cst_35 = arith.constant dense<0.000000e+00> : vector<8x128xf32>
    %139 = tpu.matmul %136, %138, %cst_35 {dimension_numbers = #tpu.dot_dimension_numbers<[1], [0], [0], [1], [0, 0, 1, 1], [], []>} : vector<8x256xbf16>, vector<256x128xbf16>, vector<8x128xf32> -> vector<8x128xf32>
    %140 = vector.extract_strided_slice %100 {offsets = [4, 0], sizes = [1, 128], strides = [1, 1]} : vector<5x128xf32> to vector<1x128xf32>
    %141 = vector.broadcast %140 : vector<1x128xf32> to vector<8x128xf32>
    %142 = arith.addf %139, %141 : vector<8x128xf32>
    %143 = arith.addf %142, %125 : vector<8x128xf32>
    %144 = vector.extract_strided_slice %100 {offsets = [2, 0], sizes = [1, 128], strides = [1, 1]} : vector<5x128xf32> to vector<1x128xf32>
    %145 = vector.extract_strided_slice %100 {offsets = [3, 0], sizes = [1, 128], strides = [1, 1]} : vector<5x128xf32> to vector<1x128xf32>
    %cst_36 = arith.constant dense<0.000000e+00> : vector<8xf32>
    %146 = vector.multi_reduction <add>, %143, %cst_36 [1] : vector<8x128xf32> to vector<8xf32>
    %147 = vector.shape_cast %146 : vector<8xf32> to vector<8x1xf32>
    %cst_37 = arith.constant 1.280000e+02 : f32
    %148 = vector.broadcast %cst_37 : f32 to vector<8x1xf32>
    %149 = arith.divf %147, %148 : vector<8x1xf32>
    %150 = vector.broadcast %149 : vector<8x1xf32> to vector<8x128xf32>
    %151 = arith.subf %143, %150 : vector<8x128xf32>
    %152 = arith.mulf %151, %151 : vector<8x128xf32>
    %cst_38 = arith.constant dense<0.000000e+00> : vector<8xf32>
    %153 = vector.multi_reduction <add>, %152, %cst_38 [1] : vector<8x128xf32> to vector<8xf32>
    %154 = vector.shape_cast %153 : vector<8xf32> to vector<8x1xf32>
    %cst_39 = arith.constant 1.280000e+02 : f32
    %155 = vector.broadcast %cst_39 : f32 to vector<8x1xf32>
    %156 = arith.divf %154, %155 : vector<8x1xf32>
    %157 = vector.broadcast %149 : vector<8x1xf32> to vector<8x128xf32>
    %158 = arith.subf %143, %157 : vector<8x128xf32>
    %cst_40 = arith.constant 9.99999974E-6 : f32
    %159 = vector.broadcast %cst_40 : f32 to vector<8x1xf32>
    %160 = arith.addf %156, %159 : vector<8x1xf32>
    %161 = math.rsqrt %160 : vector<8x1xf32>
    %162 = vector.broadcast %161 : vector<8x1xf32> to vector<8x128xf32>
    %163 = arith.mulf %158, %162 : vector<8x128xf32>
    %164 = vector.broadcast %144 : vector<1x128xf32> to vector<8x128xf32>
    %165 = arith.mulf %163, %164 : vector<8x128xf32>
    %166 = vector.broadcast %145 : vector<1x128xf32> to vector<8x128xf32>
    %167 = arith.addf %165, %166 : vector<8x128xf32>
    %c0_41 = arith.constant 0 : index
    %c0_42 = arith.constant 0 : index
    %168 = vector.load %arg10[%c0_41, %c0_42] : memref<8x128xf32, #tpu.memory_space<vmem>>, vector<8x128xf32>
    tpu.vector_store %arg10[%c0_41, %c0_42], %167 {strides = array<i32>} : memref<8x128xf32, #tpu.memory_space<vmem>>, vector<8x128xf32>,
    return
  }
  func.func @transform_1(%arg0: i32, %arg1: i32) -> (i32, i32, i32) {
    %c0_i32 = arith.constant 0 : i32
    %c0_i32_0 = arith.constant 0 : i32
    %c0_i32_1 = arith.constant 0 : i32
    return %arg0, %c0_i32, %c0_i32_0 : i32, i32, i32
  }
  func.func @transform_2(%arg0: i32, %arg1: i32) -> (i32, i32, i32) {
    %c0_i32 = arith.constant 0 : i32
    %c0_i32_0 = arith.constant 0 : i32
    %c0_i32_1 = arith.constant 0 : i32
    return %arg1, %c0_i32, %c0_i32_0 : i32, i32, i32
  }
  func.func @transform_3(%arg0: i32, %arg1: i32) -> (i32, i32, i32) {
    %c0_i32 = arith.constant 0 : i32
    %c0_i32_0 = arith.constant 0 : i32
    %c0_i32_1 = arith.constant 0 : i32
    return %arg1, %c0_i32, %c0_i32_0 : i32, i32, i32
  }
  func.func @transform_4(%arg0: i32, %arg1: i32) -> (i32, i32, i32) {
    %c0_i32 = arith.constant 0 : i32
    %c0_i32_0 = arith.constant 0 : i32
    %c0_i32_1 = arith.constant 0 : i32
    return %arg1, %c0_i32, %c0_i32_0 : i32, i32, i32
  }
  func.func @transform_5(%arg0: i32, %arg1: i32) -> (i32, i32, i32) {
    %c0_i32 = arith.constant 0 : i32
    %c0_i32_0 = arith.constant 0 : i32
    %c0_i32_1 = arith.constant 0 : i32
    return %arg1, %c0_i32, %c0_i32_0 : i32, i32, i32
  }
  func.func @transform_6(%arg0: i32, %arg1: i32) -> (i32, i32, i32) {
    %c0_i32 = arith.constant 0 : i32
    %c0_i32_0 = arith.constant 0 : i32
    %c0_i32_1 = arith.constant 0 : i32
    return %arg1, %c0_i32, %c0_i32_0 : i32, i32, i32
  }
  func.func @transform_7(%arg0: i32, %arg1: i32) -> (i32, i32, i32) {
    %c0_i32 = arith.constant 0 : i32
    %c0_i32_0 = arith.constant 0 : i32
    %c0_i32_1 = arith.constant 0 : i32
    return %arg1, %c0_i32, %c0_i32_0 : i32, i32, i32
  }
  func.func @transform_8(%arg0: i32, %arg1: i32) -> (i32, i32) {
    %c0_i32 = arith.constant 0 : i32
    %c0_i32_0 = arith.constant 0 : i32
    return %arg0, %c0_i32 : i32, i32
  }
}

</mosaic_0001>

<bundles_post_ra>
// kernel: tpu_custom_call.1
= control target key start
LH: loop header
LB: loop body
LE: loop exit
PB: predicated region body
PF: predicated region fallthrough
CT: control target
= control target key end

     0   :  { %s4107_s0 = inlined_call_operand.vmem [shape: f32[2,8,128], index: 0, kind: input, shape index: {}]   ;;  %s4108_s1 = inlined_call_operand.hbm [shape: f32[2,8,8], index: 1, kind: input, shape index: {}]   ;;  %s4109_s2 = inlined_call_operand.hbm [shape: bf16[2,128,384], index: 2, kind: input, shape index: {}]   ;;  %s4110_s3 = inlined_call_operand.hbm [shape: bf16[2,128,128], index: 3, kind: input, shape index: {}]   ;;  %s4111_s4 = inlined_call_operand.hbm [shape: bf16[2,128,256], index: 4, kind: input, shape index: {}]   ;;  %s4112_s5 = inlined_call_operand.hbm [shape: bf16[2,256,128], index: 5, kind: input, shape index: {}]   ;;  %s4113_s6 = inlined_call_operand.vmem [shape: f32[2,5,128], index: 6, kind: input, shape index: {}]   ;;  %s4114_s7 = inlined_call_operand.vmem [shape: f32[2,1,256], index: 7, kind: input, shape index: {}]   ;;  %s4115_s8 = inlined_call_operand.hbm [shape: f32[16,128], index: 8, kind: output, shape index: {}]  }
   0x1   :  { %4138 = sst [smem:[#allocation32_spill]] %s4107_s0 }
   0x2   :  { %4139 = sst [smem:[#allocation33_spill]] %s4108_s1 }
   0x3   :  { %4140 = sst [smem:[#allocation34_spill]] %s4109_s2 }
   0x4   :  { %4141 = sst [smem:[#allocation35_spill]] %s4110_s3 }
   0x5   :  { %4142 = sst [smem:[#allocation36_spill]] %s4111_s4 }
   0x6   :  { %4143 = sst [smem:[#allocation37_spill]] %s4113_s6 }
   0x7   :  { %4144 = sst [smem:[#allocation38_spill]] %s4114_s7 }
   0x8   :  { %4145 = sst [smem:[#allocation39_spill]] %s4115_s8 }
   0x9   :  { %13 = vsyncpa [#allocation4], 0 }
   0xa   :  { %15 = vsyncpa [#allocation4 + $0x1], 0 }
   0xb   :  { %16 = vsyncpa [#allocation7], 0 }
   0xc   :  { %18 = vsyncpa [#allocation7 + $0x1], 0 }
   0xd   :  { %19 = vsyncpa [#allocation10], 0 }
   0xe   :  { %21 = vsyncpa [#allocation10 + $0x1], 0 }
   0xf   :  { %22 = vsyncpa [#allocation5], 0 }
  0x10   :  { %24 = vsyncpa [#allocation5 + $0x1], 0  ;;  %s3385_s27 = smov 0   ;;  %s3387_s28 = smov 0  }
  0x11   :  { %s3389_s29 = smov 0   ;;  %s3391_s30 = smov 0  }
  0x12   :  { %s3393_s9 = smov 0   ;;  %s3395_s10 = smov 0  }
  0x13   :  { %s3397_s11 = smov 0   ;;  %s3399_s12 = smov 0  }
  0x14   :  { %s3401_s13 = smov 0   ;;  %s3403_s14 = smov 0  }
  0x15   :  { %s3405_s15 = smov 0  }
  0x16 LB: > { %4146 = sst [smem:[#allocation19_spill]] %s3280_s28  ;;  %p4119_p0 = scmp.eq.s32.totalorder %s3316_s15, 0  ;;  %s3316_s15 = sphi %s3405_s15, %s30_s15   ;;  %s3312_s14 = sphi %s3403_s14, %s4207_s14   ;;  %s3308_s13 = sphi %s3401_s13, %s4206_s13   ;;  %s3304_s12 = sphi %s3399_s12, %s4200_s12   ;;  %s3300_s11 = sphi %s3397_s11, %s4205_s11   ;;  %s3296_s10 = sphi %s3395_s10, %s4199_s10   ;;  %s3292_s9 = sphi %s3393_s9, %s4204_s9   ;;  %s3288_s30 = sphi %s3391_s30, %s4203_s30   ;;  %s3284_s29 = sphi %s3389_s29, %s4197_s29   ;;  %s3280_s28 = sphi %s3387_s28, %s4196_s28   ;;  %s3276_s27 = sphi %s3385_s27, %s4195_s27  }
  0x17   : > { %4147 = sst [smem:[#allocation20_spill]] %s3284_s29  ;;  %p82_p1 = scmp.ne.s32.totalorder %s3284_s29, %s3280_s28 }
  0x18   : > { %4148 = sst [smem:[#allocation21_spill]] %s3296_s10  ;;  %p4118_p2 = scmp.lt.s32.totalorder %s3316_s15, 4 }
  0x19   : > { %4149 = sst [smem:[#allocation22_spill]] %s3300_s11  ;;  %s4117_s17 = sand.u32 1, %s3316_s15  }
  0x1a   : > { %4150 = sst [smem:[#allocation23_spill]] %s3304_s12  ;;  %p84_p3 = por %p82_p1, %p4119_p0 }
  0x1b   : > { %4151 = sst [smem:[#allocation24_spill]] %s3312_s14  ;;  %s3449_s18 = sand.u32 1, %s3284_s29  }
  0x1c   : > { %s2778_s19 = smul.u32 3072, %s3308_s13  ;;  %p3455_p4 = pnand %p4118_p2, %p84_p3 }
  0x1d   : > { %s2777_s20 = smul.u32 192, %s3449_s18  ;;  %s4153_s2 = sld [smem:[#allocation34_spill]] }
  0x1e   : > { %s4152_s21 = scalar_select %p3455_p4, 1, 0 }
  0x1f   : > { %s290_s25 = scalar_lea.vmem [#allocation6], %s2777_s20  ;;  %s3469_s16 = scalar_lea.sflag [#allocation7], %s4117_s17 }
  0x20   : > { %s297_s26 = sshll.u32 %s290_s25, 4  ;;  %p3475_p7 = pneg %p3455_p4  ;;  %s3464_s26 = int_to_ptr.vmem [resolvable:$true] %s297_s26 }
  0x23   : > { %s3462_s24 = scalar_lea.hbm %s4153_s2, %s2778_s19  ;;  %s3039_s23 = scalar_lea.hbm %s4153_s2, 6144 }
  0x24   : > { %s3034_s8 = scalar_lea.hbm %s3462_s24, 3072  ;;  %p3040_p10 = scmp.lt.u32.totalorder %s3462_s24, %s4153_s2 }
  0x25   : > { %p3035_p6 = scmp.ne.s32.totalorder %s3462_s24, %s3034_s8  ;;  %p3041_p11 = scmp.lt.u32.totalorder %s3039_s23, %s3034_s8 }
  0x26   : > { %p3043_p13 = scmp.lt.u32.totalorder %s3034_s8, %s3462_s24 }
  0x27   : > { %p3037_p8 = pnand %p3475_p7, %p3035_p6  ;;  %p3042_p12 = por %p3041_p11, %p3040_p10 }
  0x29   : > { %p3038_p9 = pneg %p3037_p8  ;;  %p3044_p1 = por %p3043_p13, %p3042_p12 }
  0x2b   : > { %p3045_p3 = pnand %p3044_p1, %p3038_p9 }
  0x2d   : > { %3048 = shalt.err (!%p3045_p3)
}
  0x2e   : > { %s3049_s17 = scalar_lea.vmem %s3464_s26, 3072  ;;  %s3318_s19 = smov [#allocation6]  }
  0x2f   : > { %p3050_p6 = scmp.ne.s32.totalorder %s3464_s26, %s3049_s17  ;;  %s3054_s20 = sshll.u32 %s3318_s19, 4  ;;  %s3055_s20 = int_to_ptr.vmem [resolvable:$false] %s3054_s20 }
  0x30   : > { %s3056_s0 = scalar_lea.vmem %s3055_s20, 6144  ;;  %p3057_p0 = scmp.lt.s32.totalorder %s3464_s26, %s3055_s20 }
  0x31   : > { %p3052_p8 = pnand %p3050_p6, %p3475_p7  ;;  %p3058_p5 = scmp.lt.s32.totalorder %s3056_s0, %s3049_s17 }
  0x33   : > { %p3053_p2 = pneg %p3052_p8  ;;  %p3059_p10 = por %p3058_p5, %p3057_p0 }
  0x35   : > { %p3060_p11 = pnand %p3059_p10, %p3053_p2 }
  0x37   : > { %3063 = shalt.err (!%p3060_p11)
}
  0x38   : > { %s3319_s8 = smov 192   ;;  %s3320_s23 = smov 12  }
  0x39   : > { %2798 = dma.hbm_to_vmem [thread:$0]  (!%p3455_p4), %s3462_s24, 3072, %s3464_s26, %s3469_s16, %s3319_s8, %s3319_s8, %s3320_s23  }
  0x3a   : > { %p382_p9 = scmp.lt.s32.totalorder %s3316_s15, 5  ;;  %s2465_s17 = sshll.u32 %s3449_s18, 7 }
  0x3b   : > { %s4120_s25 = sshll.u32 %s3308_s13, 11  ;;  %p4155_p0 = scmp.ge.s32.totalorder %s3316_s15, 1 }
  0x3c   : > { %s4157_s4 = sld [smem:[#allocation36_spill]]  ;;  %s332_s24 = scalar_lea.vmem [#allocation9], %s2465_s17 }
  0x3d   : > { %p3504_p2 = pnand %p4155_p0, %p382_p9  ;;  %s339_s26 = sshll.u32 %s332_s24, 4  ;;  %s3517_s26 = int_to_ptr.vmem [resolvable:$true] %s339_s26 }
  0x3e   : > { %s4158_s8 = sand.u32 1, %s3316_s15  }
  0x3f   : > { %s4156_s19 = scalar_select %p3504_p2, 1, 0 }
  0x40   : > { %s3521_s23 = scalar_lea.sflag [#allocation10], %s4158_s8 }
  0x42   : > { %s3513_s2 = scalar_lea.hbm %s4157_s4, %s4120_s25  ;;  %s3069_s25 = scalar_lea.hbm %s4157_s4, 4096 }
  0x43   : > { %s3064_s12 = scalar_lea.hbm %s3513_s2, 2048  ;;  %p3070_p1 = scmp.lt.u32.totalorder %s3513_s2, %s4157_s4 }
  0x44   : > { %p3065_p5 = scmp.ne.s32.totalorder %s3513_s2, %s3064_s12  ;;  %p3071_p3 = scmp.lt.u32.totalorder %s3069_s25, %s3064_s12 }
  0x45   : > { %p3073_p8 = scmp.lt.u32.totalorder %s3064_s12, %s3513_s2 }
  0x46   : > { %p3067_p12 = pnand %p3065_p5, %p3475_p7  ;;  %p3072_p6 = por %p3071_p3, %p3070_p1 }
  0x48   : > { %p3068_p13 = pneg %p3067_p12  ;;  %p3074_p10 = por %p3073_p8, %p3072_p6 }
  0x4a   : > { %p3075_p11 = pnand %p3074_p10, %p3068_p13 }
  0x4c   : > { %3078 = shalt.err (!%p3075_p11)
}
  0x4d   : > { %s3079_s24 = scalar_lea.vmem %s3517_s26, 2048  ;;  %s3321_s8 = smov [#allocation9]  }
  0x4e   : > { %p3080_p9 = scmp.ne.s32.totalorder %s3517_s26, %s3079_s24  ;;  %s3084_s20 = sshll.u32 %s3321_s8, 4  ;;  %s3085_s20 = int_to_ptr.vmem [resolvable:$false] %s3084_s20 }
  0x4f   : > { %s3086_s6 = scalar_lea.vmem %s3085_s20, 4096  ;;  %p3087_p12 = scmp.lt.s32.totalorder %s3517_s26, %s3085_s20 }
  0x50   : > { %p3082_p0 = pnand %p3080_p9, %p3475_p7  ;;  %p3088_p2 = scmp.lt.s32.totalorder %s3086_s6, %s3079_s24 }
  0x52   : > { %p3083_p5 = pneg %p3082_p0  ;;  %p3089_p1 = por %p3088_p2, %p3087_p12 }
  0x54   : > { %p3090_p3 = pnand %p3089_p1, %p3083_p5 }
  0x56   : > { %3093 = shalt.err (!%p3090_p3)
}
  0x57   : > { %s3322_s7 = smov 128   ;;  %s3323_s12 = smov 8  }
  0x58   : > { %2804 = dma.hbm_to_vmem [thread:$0]  (!%p3455_p4), %s3513_s2, 2048, %s3517_s26, %s3521_s23, %s3322_s7, %s3322_s7, %s3323_s12  }
  0x59   : > { %s4159_s25 = sshll.u32 %s3308_s13, 11  ;;  %s353_s20 = scalar_lea.vmem [#allocation11], %s2465_s17 }
  0x5a   : > { %s3550_s8 = scalar_lea.hbm %s4112_s5, %s4159_s25  ;;  %s360_s6 = sshll.u32 %s353_s20, 4  ;;  %s3554_s6 = int_to_ptr.vmem [resolvable:$true] %s360_s6 }
  0x5b   : > { %s3557_s4 = sadd.s32 4294967295, %s3316_s15   ;;  %s2456_s2 = sadd.s32 4294967294, %s3316_s15  }
  0x5c   : > { %4160 = sst [smem:[#allocation25_spill]] %s3557_s4  ;;  %s39_s26 = sadd.s32 1, %s3308_s13 }
  0x5d   : > { %p40_p2 = scmp.ge.s32.totalorder %s39_s26, 2  ;;  %s42_s7 = sadd.s32 1, %s3312_s14 }
  0x5e   : > { %s49_s12 = sadd.s32 1, %s3296_s10  ;;  %p56_p13 = scmp.ne.s32.totalorder %s3296_s10, %s3292_s9 }
  0x5f   : > { %s4209_s26 = smov (%p40_p2, %s39_s26), 0  ;;  %s4211_s7 = smov (!%p40_p2, %s42_s7), %s3312_s14 }
  0x60   : > { %4161 = sst [smem:[#allocation26_spill]] %s4209_s26  ;;  %p4162_p6 = scmp.eq.s32.totalorder %s3316_s15, 0 }
  0x61   : > { %p62_p10 = scmp.ne.s32.totalorder %s3292_s9, %s3288_s30  ;;  %p44_p11 = scmp.ge.s32.totalorder %s4211_s7, 2 }
  0x62   : > { %p3573_p8 = por %p4162_p6, %p56_p13  ;;  %p63_p9 = scmp.eq.s32.totalorder %s3557_s4, 0 }
  0x63   : > { %s72_s25 = ssub.s32 %s3308_s13, %s4209_s26  ;;  %p88_p0 = scmp.ne.s32.totalorder %s3280_s28, %s3276_s27 }
  0x64   : > { %s4213_s7 = smov (%p44_p11, %s4211_s7), 0  ;;  %p3589_p5 = por %p63_p9, %p62_p10 }
  0x65   : > { %4164 = sst [smem:[#allocation27_spill]] %s4213_s7  ;;  %p73_p12 = scmp.eq.s32.totalorder %s72_s25, 0 }
  0x66   : > { %s4165_s0 = scalar_select %p3589_p5, 1, 0 }
  0x67   : > { %s46_s24 = ssub.s32 %s3312_s14, %s4213_s7  ;;  %p3595_p1 = por %p88_p0, %p63_p9 }
  0x68   : > { %4166 = sst [smem:[#allocation28_spill]] %s4165_s0  ;;  %p47_p3 = scmp.eq.s32.totalorder %s46_s24, 0 }
  0x69   : > { %s4167_s20 = scalar_select %p3595_p1, 1, 0 }
  0x6a   : > { %p242_p2 = scmp.eq.s32.totalorder %s3557_s4, 3  ;;  %s4169_s27 = sadd.s32 1, %s3284_s29 }
  0x6b   : > { %4168 = sst [smem:[#allocation29_spill]] %s4167_s20  ;;  %p248_p11 = scmp.eq.s32.totalorder %s2456_s2, 3 }
  0x6c   : > { %s3603_s26 = scalar_select %p73_p12, %s3284_s29, %s4169_s27  }
  0x6d   : > { %s3606_s11 = scalar_select %p47_p3, %s3296_s10, %s49_s12  }
  0x6e   : > { %4170 = sst [smem:[#allocation30_spill]] %s3603_s26  ;;  %p3611_p6 = por %p242_p2, %p56_p13 }
  0x6f   : > { %4171 = sst [smem:[#allocation31_spill]] %s3606_s11  ;;  %s268_s25 = sand.u32 1, %s3296_s10  }
  0x70   : > { %s4172_s28 = scalar_select %p3611_p6, 1, 0 }
  0x71   : > { %s2460_s7 = sshll.u32 %s3312_s14, 7  ;;  %p3620_p9 = por %p248_p11, %p62_p10 }
  0x72   : > { %s2459_s24 = sshll.u32 %s268_s25, 3  ;;  %s4174_s1 = sld [smem:[#allocation33_spill]] }
  0x73   : > { %s4173_s0 = scalar_select %p3620_p9, 1, 0 }
  0x74   : > { %p4175_p0 = scmp.lt.s32.totalorder %s3316_s15, 4  ;;  %s272_s12 = scalar_lea.vmem [#allocation3], %s2459_s24 }
  0x75   : > { %s279_s14 = sshll.u32 %s272_s12, 4  ;;  %s2462_s11 = sshll.u32 %s3449_s18, 6  ;;  %s3638_s14 = int_to_ptr.vmem [resolvable:$true] %s279_s14 }
  0x76   : > { %p3633_p13 = pnand %p4175_p0, %p3573_p8  ;;  %s269_s4 = scalar_lea.sflag [#allocation4], %s268_s25 }
  0x78   : > { %s3627_s27 = scalar_lea.hbm %s4174_s1, %s2460_s7  ;;  %p3096_p12 = pneg %p3633_p13 }
  0x79   : > { %s3094_s7 = scalar_lea.hbm %s3627_s27, 128  ;;  %s3099_s10 = scalar_lea.hbm %s4174_s1, 256 }
  0x7a   : > { %p3095_p10 = scmp.ne.s32.totalorder %s3627_s27, %s3094_s7  ;;  %p3100_p8 = scmp.lt.u32.totalorder %s3627_s27, %s4174_s1 }
  0x7b   : > { %p3101_p11 = scmp.lt.u32.totalorder %s3099_s10, %s3094_s7  ;;  %p3103_p9 = scmp.lt.u32.totalorder %s3094_s7, %s3627_s27 }
  0x7c   : > { %p3097_p3 = pnand %p3096_p12, %p3095_p10 }
  0x7d   : > { %p3102_p0 = por %p3101_p11, %p3100_p8 }
  0x7e   : > { %p3098_p2 = pneg %p3097_p3 }
  0x7f   : > { %p3104_p6 = por %p3103_p9, %p3102_p0 }
  0x81   : > { %p3105_p1 = pnand %p3104_p6, %p3098_p2 }
  0x83   : > { %3108 = shalt.err (!%p3105_p1)
}
  0x84   : > { %s3109_s25 = scalar_lea.vmem %s3638_s14, 128  ;;  %s3324_s24 = smov [#allocation3]  }
  0x85   : > { %p3110_p10 = scmp.ne.s32.totalorder %s3638_s14, %s3109_s25  ;;  %s3114_s12 = sshll.u32 %s3324_s24, 4  ;;  %s3115_s12 = int_to_ptr.vmem [resolvable:$false] %s3114_s12 }
  0x86   : > { %s3116_s29 = scalar_lea.vmem %s3115_s12, 256  ;;  %p3117_p4 = scmp.lt.s32.totalorder %s3638_s14, %s3115_s12 }
  0x87   : > { %p3112_p3 = pnand %p3110_p10, %p3096_p12  ;;  %p3118_p8 = scmp.lt.s32.totalorder %s3116_s29, %s3109_s25 }
  0x89   : > { %p3113_p5 = pneg %p3112_p3  ;;  %p3119_p11 = por %p3118_p8, %p3117_p4 }
  0x8b   : > { %p3120_p9 = pnand %p3119_p11, %p3113_p5 }
  0x8d   : > { %3123 = shalt.err (!%p3120_p9)
}
  0x8e   : > { %2795 = dma.hbm_to_vmem [thread:$0]  (!%p3633_p13), %s3627_s27, 128, %s3638_s14, %s269_s4  }
  0x8f   : > { %s2566_s10 = sshll.u32 %s3308_s13, 10  ;;  %s4177_s3 = sld [smem:[#allocation35_spill]] }
  0x90   : > { %s311_s20 = scalar_lea.vmem [#allocation8], %s2462_s11 }
  0x91   : > { %s318_s25 = sshll.u32 %s311_s20, 4  ;;  %s3673_s25 = int_to_ptr.vmem [resolvable:$true] %s318_s25 }
  0x95   : > { %s3669_s17 = scalar_lea.hbm %s4177_s3, %s2566_s10  ;;  %s3129_s4 = scalar_lea.hbm %s4177_s3, 2048 }
  0x96   : > { %s3124_s2 = scalar_lea.hbm %s3669_s17, 1024  ;;  %p3130_p6 = scmp.lt.u32.totalorder %s3669_s17, %s4177_s3 }
  0x97   : > { %p3125_p4 = scmp.ne.s32.totalorder %s3669_s17, %s3124_s2  ;;  %p3131_p13 = scmp.lt.u32.totalorder %s3129_s4, %s3124_s2 }
  0x98   : > { %p3133_p2 = scmp.lt.u32.totalorder %s3124_s2, %s3669_s17 }
  0x99   : > { %p3127_p5 = pnand %p3125_p4, %p3475_p7  ;;  %p3132_p12 = por %p3131_p13, %p3130_p6 }
  0x9b   : > { %p3128_p1 = pneg %p3127_p5  ;;  %p3134_p0 = por %p3133_p2, %p3132_p12 }
  0x9d   : > { %p3135_p10 = pnand %p3134_p0, %p3128_p1 }
  0x9f   : > { %3138 = shalt.err (!%p3135_p10)
}
  0xa0   : > { %s3139_s11 = scalar_lea.vmem %s3673_s25, 1024  ;;  %s3325_s18 = smov [#allocation8]  }
  0xa1   : > { %p3140_p3 = scmp.ne.s32.totalorder %s3673_s25, %s3139_s11  ;;  %s3144_s29 = sshll.u32 %s3325_s18, 4  ;;  %s3145_s29 = int_to_ptr.vmem [resolvable:$false] %s3144_s29 }
  0xa2   : > { %s3146_s10 = scalar_lea.vmem %s3145_s29, 2048  ;;  %p3147_p9 = scmp.lt.s32.totalorder %s3673_s25, %s3145_s29 }
  0xa3   : > { %p3142_p8 = pnand %p3140_p3, %p3475_p7  ;;  %p3148_p4 = scmp.lt.s32.totalorder %s3146_s10, %s3139_s11 }
  0xa5   : > { %p3143_p11 = pneg %p3142_p8  ;;  %p3149_p5 = por %p3148_p4, %p3147_p9 }
  0xa7   : > { %p3150_p6 = pnand %p3149_p5, %p3143_p11 }
  0xa9   : > { %3153 = shalt.err (!%p3150_p6)
}
  0xaa   : > { %s3326_s26 = smov 64   ;;  %s3327_s7 = smov 4  }
  0xab   : > { %p4178_p1 = scmp.ne.s32.totalorder %s4152_s21, 0  ;;  %s3154_s20 = scalar_lea.hbm %s3550_s8, 2048 }
  0xac   : > { %p3155_p13 = scmp.ne.s32.totalorder %s3550_s8, %s3154_s20  ;;  %s3159_s27 = scalar_lea.hbm %s4112_s5, 4096 }
  0xad   : > { %2801 = dma.hbm_to_vmem [thread:$0]  (!%p4178_p1), %s3669_s17, 1024, %s3673_s25, %s3469_s16, %s3326_s26, %s3326_s26, %s3327_s7  }
  0xae   : > { %p3157_p12 = pnand %p3155_p13, %p3475_p7  ;;  %p3160_p0 = scmp.lt.u32.totalorder %s3550_s8, %s4112_s5 }
  0xaf   : > { %p3161_p10 = scmp.lt.u32.totalorder %s3159_s27, %s3154_s20  ;;  %p3163_p8 = scmp.lt.u32.totalorder %s3154_s20, %s3550_s8 }
  0xb0   : > { %p3158_p2 = pneg %p3157_p12 }
  0xb1   : > { %p3162_p3 = por %p3161_p10, %p3160_p0 }
  0xb3   : > { %p3164_p11 = por %p3163_p8, %p3162_p3 }
  0xb5   : > { %p3165_p9 = pnand %p3164_p11, %p3158_p2 }
  0xb7   : > { %3168 = shalt.err (!%p3165_p9)
}
  0xb8   : > { %s3169_s16 = scalar_lea.vmem %s3554_s6, 2048  ;;  %s3328_s17 = smov [#allocation11]  }
  0xb9   : > { %p3170_p4 = scmp.ne.s32.totalorder %s3554_s6, %s3169_s16  ;;  %s3174_s25 = sshll.u32 %s3328_s17, 4  ;;  %s3175_s25 = int_to_ptr.vmem [resolvable:$false] %s3174_s25 }
  0xba   : > { %s3176_s12 = scalar_lea.vmem %s3175_s25, 4096  ;;  %p3177_p13 = scmp.lt.s32.totalorder %s3554_s6, %s3175_s25 }
  0xbb   : > { %p3172_p5 = pnand %p3170_p4, %p3475_p7  ;;  %p3178_p12 = scmp.lt.s32.totalorder %s3176_s12, %s3169_s16 }
  0xbd   : > { %p3173_p6 = pneg %p3172_p5  ;;  %p3179_p0 = por %p3178_p12, %p3177_p13 }
  0xbf   : > { %p3180_p10 = pnand %p3179_p0, %p3173_p6 }
  0xc1   : > { %3183 = shalt.err (!%p3180_p10)
}
  0xc2   : > { %2807 = dma.hbm_to_vmem [thread:$0]  (!%p4178_p1), %s3550_s8, 2048, %s3554_s6, %s3521_s23, %s3326_s26, %s3326_s26, %s3327_s7  }
  0xc3   : > { %p4179_p7 = scmp.ne.s32.totalorder %s4156_s19, 0 }
  0xc4   : > { %s4180_s22 = sld [smem:[#allocation28_spill]] (!%p4179_p7)  ;;  %s3728_s11 = sand.u32 (!%p4179_p7), 1, %s3292_s9  }
  0xc5   : > { %386 = sbr.rel (%p4179_p7) target bundleno = 2799 (0xaef), region = 48  ;;  %s2472_s18 = sshll.u32 (!%p4179_p7), %s3728_s11, 3 }
  0xc6   : > { %s389_s29 = scalar_lea.sflag (!%p4179_p7), [#allocation4], %s3728_s11  ;;  %s3732_s10 = scalar_lea.vmem (!%p4179_p7), [#allocation3], %s2472_s18 }
  0xca   : > { %p4181_p2 = scmp.ne.s32.totalorder (!%p4179_p7), %s4180_s22, 0 }
  0xcc   : > { %3257 = dma.done.wait (%p4181_p2), %s389_s29, 128  }
  0xcd   : > { %3259 = vsyncadd (%p4181_p2), %s389_s29, 4294967168  ;;  %s4182_s21 = sld [smem:[#allocation25_spill]]  ;;  %s4183_s23 = sld [smem:[#allocation19_spill]] }
  0xce   : > { %s4184_s8 = sld [smem:[#allocation29_spill]] }
  0xd3   : > { %s397_s19 = sand.u32 1, %s4182_s21   ;;  %s399_s6 = sand.u32 1, %s4183_s23  }
  0xd4   : > { %s2779_s26 = smul.u32 192, %s399_s6  ;;  %s398_s7 = scalar_lea.sflag [#allocation7], %s397_s19 }
  0xd5   : > { %p4185_p1 = scmp.ne.s32.totalorder %s4184_s8, 0 }
  0xd6   : > { %s3740_s20 = scalar_lea.vmem [#allocation6], %s2779_s26 }
  0xd7   : > { %3261 = dma.done.wait (%p4185_p1), %s398_s7, 4096  }
  0xd8   : > { %3263 = vsyncadd (%p4185_p1), %s398_s7, 4294963200  ;;  %s2473_s2 = sshll.u32 %s399_s6, 6  ;;  %s2474_s14 = sshll.u32 %s399_s6, 7 }
  0xd9   : > { %s3746_s27 = scalar_lea.vmem [#allocation8], %s2473_s2  ;;  %s416_s4 = scalar_lea.sflag [#allocation10], %s397_s19 }
  0xda   : > { %s3748_s24 = scalar_lea.vmem [#allocation9], %s2474_s14 }
  0xdb   : > { %3265 = dma.done.wait (%p4185_p1), %s416_s4, 4096  }
  0xdc   : > { %3267 = vsyncadd (%p4185_p1), %s416_s4, 4294963200  ;;  %s4186_s16 = sld [smem:[#allocation22_spill]]  ;;  %s4187_s21 = sld [smem:[#allocation37_spill]] }
  0xdd   : > { %s4188_s26 = sld [smem:[#allocation38_spill]]  ;;  %s3766_s2 = scalar_lea.vmem [#allocation11], %s2474_s14 }
  0xde   : > { %s3768_s8 = scalar_lea.vmem [#allocation12], %s2472_s18 }
  0xe2   : > { %p487_p3 = scmp.lt.s32.totalorder %s4186_s16, 1  ;;  %p2479_p8 = scmp.ne.s32.totalorder %s4186_s16, 0 }
  0xe3   : > { %s4189_s4 = sld [smem:[#allocation23_spill]] (!%p2479_p8)  ;;  %s4190_s22 = sld [smem:[#allocation32_spill]] (!%p2479_p8) }
  0xe4   : > { %s488_s17 = scalar_select %p487_p3, %s4186_s16, 1 }
  0xe5   : > { %499 = sbr.rel (%p2479_p8) target bundleno = 240 (0xf0), region = 72 }
  0xe6   : > { %s2477_s25 = sshll.u32 %s488_s17, 3  ;;  %s2478_s12 = sshll.u32 %s488_s17, 1 }
  0xe7   : > { %s3759_s23 = scalar_lea.vmem %s4187_s21, %s2477_s25  ;;  %s3764_s7 = scalar_lea.vmem %s4188_s26, %s2478_s12 }
  0xe9   : > { %s2480_s17 = sshll.u32 (!%p2479_p8), %s4189_s4, 3 }
  0xea   : > { %s501_s25 = scalar_lea.vmem (!%p2479_p8), %s4190_s22, %s2480_s17 }
  0xeb   : > { %v534_v0 = vld [vmem:[%s501_s25] sm:$0xff] (!%p2479_p8) }
  0xec   : > { %535 = vst [vmem:[%s3768_s8] sm:$0xff] %v534_v0 }
  0xed   : > { %543 = vsyncadd [#allocation2], 128 }
  0xee   : > { %3268 = dma.done.wait [#allocation2], 128 }
  0xef   : > { %3269 = vsyncadd [#allocation2], 4294967168 }
  0xf0 PF: > { %v2918_v1 = vld [vmem:[%s3740_s20 + $0x4] ss:$12 sps:$4 sm:$0xff]   ;;  %v2920_v2 = vld [vmem:[%s3740_s20] ss:$12 sps:$4 sm:$0xff]   ;;  %v3329_v3 = vmov 0   ;;  %v3330_v4 = vmov 0.0  }
  0xf1   : > { %741 = vmatprep.mubr.bf16.mxu0 %v3329_v3  ;;  %2641 = vmatprep.subr.bf16.mxu1 %v3330_v4  ;;  %v2921_v5 = vld [vmem:[%s3740_s20 + $0x1c] ss:$12 sps:$4 sm:$0xff]   ;;  %v2923_v6 = vld [vmem:[%s3740_s20 + $0x18] ss:$12 sps:$4 sm:$0xff]   ;;  %v2924_v7 = vld [vmem:[%s3740_s20 + $0x34] ss:$12 sps:$4 sm:$0xff]  }
  0xf2   : > { %709 = vmatprep.subr.bf16.mxu0 %v2918_v1  ;;  %v2926_v8 = vld [vmem:[%s3740_s20 + $0x30] ss:$12 sps:$4 sm:$0xff]   ;;  %v2927_v9 = vld [vmem:[%s3740_s20 + $0x4c] ss:$12 sps:$4 sm:$0xff]   ;;  %v2929_v10 = vld [vmem:[%s3740_s20 + $0x48] ss:$12 sps:$4 sm:$0xff]  }
  0xf3   : > { %710 = vmatpush1.bf16.msra.mxu0 %v2920_v2  ;;  %v2942_v11 = vld [vmem:[%s3740_s20 + $0x8] ss:$12 sps:$4 sm:$0xff]   ;;  %v2930_v12 = vld [vmem:[%s3740_s20 + $0x64] ss:$12 sps:$4 sm:$0xff]   ;;  %v2943_v13 = vld [vmem:[%s3740_s20 + $0x20] ss:$12 sps:$4 sm:$0xff]  }
  0xf4   : > { %711 = vmatprep.subr.bf16.mxu0 %v2921_v5  ;;  %2642 = vmatpush3.bf16.msra.mxu1 %v2942_v11  ;;  %v2932_v14 = vld [vmem:[%s3740_s20 + $0x60] ss:$12 sps:$4 sm:$0xff]   ;;  %v2933_v15 = vld [vmem:[%s3740_s20 + $0x7c] ss:$12 sps:$4 sm:$0xff]   ;;  %v2935_v16 = vld [vmem:[%s3740_s20 + $0x78] ss:$12 sps:$4 sm:$0xff]  }
  0xf5   : > { %2643 = vmatprep.subr.bf16.mxu1 %v3330_v4  ;;  %v2944_v17 = vld [vmem:[%s3740_s20 + $0x38] ss:$12 sps:$4 sm:$0xff]   ;;  %v2936_v18 = vld [vmem:[%s3740_s20 + $0x94] ss:$12 sps:$4 sm:$0xff]   ;;  %v2945_v19 = vld [vmem:[%s3740_s20 + $0x50] ss:$12 sps:$4 sm:$0xff]  }
  0xf6   : > { %v2938_v20 = vld [vmem:[%s3740_s20 + $0x90] ss:$12 sps:$4 sm:$0xff]   ;;  %v2939_v21 = vld [vmem:[%s3740_s20 + $0xac] ss:$12 sps:$4 sm:$0xff]   ;;  %v2946_v22 = vld [vmem:[%s3740_s20 + $0x68] ss:$12 sps:$4 sm:$0xff]  }
  0xf7   : > { %712 = vmatpush1.bf16.msra.mxu0 %v2923_v6  ;;  %v2941_v23 = vld [vmem:[%s3740_s20 + $0xa8] ss:$12 sps:$4 sm:$0xff]   ;;  %v2947_v25 = vld [vmem:[%s3740_s20 + $0x80] ss:$12 sps:$4 sm:$0xff]   ;;  %v2948_v27 = vld [vmem:[%s3740_s20 + $0x98] ss:$12 sps:$4 sm:$0xff]  }
  0xf8   : > { %713 = vmatprep.subr.bf16.mxu0 %v2924_v7  ;;  %2644 = vmatpush3.bf16.msra.mxu1 %v2943_v13  ;;  %v3803_v24 = vld [vmem:[%s3768_s8] sm:$0xff]  ;;  %v2949_v28 = vld [vmem:[%s3740_s20 + $0xb0] ss:$12 sps:$4 sm:$0xff]   ;;  %vm3331_vm0 = vmmov 0   ;;  %vm881_vm1 = vcmask 130048   ;;  %s3332_s1 = smov 96  }
  0xf9   : > { %2645 = vmatprep.subr.bf16.mxu1 %v3330_v4  ;;  %v548_v26 = vpack.c.bf16 %v3803_v24, %v3803_v24  ;;  %2657 = vmatprep.mubr.msk.bf16.mxu1 %vm3331_vm0, %v3330_v4  ;;  %s3333_s3 = smov 112   ;;  %s3334_s18 = smov 64   ;;  %vm1350_vm2 = vcmask 1043456   ;;  %vm1250_vm3 = vcmask 64512   ;;  %vm1745_vm4 = vcmask 261120  }
  0xfa   : > { %s3335_s20 = smov 80   ;;  %s3336_s14 = smov 48   ;;  %vm1747_vm5 = vcmask 392192   ;;  %vm1749_vm6 = vcmask 523264   ;;  %vm1751_vm7 = vcmask 654336   ;;  %vm1753_vm8 = vcmask 785408  }
  0xfb   : > { %714 = vmatpush1.bf16.msra.mxu0 %v2926_v8  ;;  %s3337_s16 = smov 32   ;;  %s3338_s12 = smov 16   ;;  %vm1755_vm9 = vcmask 916480  }
  0xfc   : > { %715 = vmatprep.subr.bf16.mxu0 %v2927_v9  ;;  %2646 = vmatpush3.bf16.msra.mxu1 %v2944_v17  ;;  %s2235_s19 = scalar_lea.sflag [#allocation5], %s3728_s11  ;;  %p4193_p9 = scmp.ne.s32.totalorder %s4172_s28, 0 }
  0xfd   : > { %2647 = vmatprep.subr.bf16.mxu1 %v3330_v4 }
  0xff   : > { %716 = vmatpush1.bf16.msra.mxu0 %v2929_v10 }
 0x100   : > { %717 = vmatprep.subr.bf16.mxu0 %v2930_v12  ;;  %2648 = vmatpush3.bf16.msra.mxu1 %v2945_v19 }
 0x101   : > { %2649 = vmatprep.subr.bf16.mxu1 %v3330_v4 }
 0x103   : > { %718 = vmatpush1.bf16.msra.mxu0 %v2932_v14 }
 0x104   : > { %719 = vmatprep.subr.bf16.mxu0 %v2933_v15  ;;  %2650 = vmatpush3.bf16.msra.mxu1 %v2946_v22  ;;  %v880_v15 = vld [vmem:[%s3732_s10] sm:$0xff]  ;;  %s4191_s10 = sld [smem:[#allocation23_spill]] }
 0x105   : > { %2651 = vmatprep.subr.bf16.mxu1 %v3330_v4 }
 0x107   : > { %720 = vmatpush1.bf16.msra.mxu0 %v2935_v16 }
 0x108   : > { %721 = vmatprep.subr.bf16.mxu0 %v2936_v18  ;;  %2652 = vmatpush3.bf16.msra.mxu1 %v2947_v25 }
 0x109   : > { %2653 = vmatprep.subr.bf16.mxu1 %v3330_v4 }
 0x10b   : > { %722 = vmatpush1.bf16.msra.mxu0 %v2938_v20 }
 0x10c   : > { %723 = vmatprep.subr.bf16.mxu0 %v2939_v21  ;;  %2654 = vmatpush3.bf16.msra.mxu1 %v2948_v27 }
 0x10d   : > { %2655 = vmatprep.subr.bf16.mxu1 %v3330_v4 }
 0x10f   : > { %724 = vmatpush1.bf16.msra.mxu0 %v2941_v23 }
 0x110   : > { %2685 = vmatprep.subr.bf16.mxu0 %v3330_v4  ;;  %2656 = vmatpush3.bf16.msra.mxu1 %v2949_v28 }
 0x111   : > { %2661 = vmatprep.subr.bf16.mxu1 %v3330_v4 }
 0x112   : > { %742 = vmatmul.mubr.bf16.vlgmr.msra.gmra.mrb[0].mxu0 %v548_v26 }
 0x113   : > { %2687 = vmatprep.mubr.msk.bf16.mxu0 %vm3331_vm0, %v3330_v4  ;;  %2658 = vmatmul.mubr.bf16.vlgmr.msra.gmra.mrb[0].mxu1 %v548_v26 }
 0x114   : > { %2663 = vmatprep.mubr.msk.bf16.mxu1 %vm3331_vm0, %v3330_v4 }
 0x1e5   : > { %v743_v29 = vpop.f32.mrb[0].mxu0 }
 0x1e6   : > { %v745_v30 = vpop.f32.mrb[1].mxu0  ;;  %v812_v35 = vpack.c.bf16 %v743_v29, %v743_v29  ;;  %v3841_v36 = vpop.f32.mrb[0].mxu1 }
 0x1e7   : > { %824 = vrot.lane.b32.xlu1 %v745_v30, %s3332_s1  ;;  %821 = vrot.lane.b32.xlu0 %v745_v30, %s3333_s3  ;;  %v747_v31 = vpop.f32.mrb[2].mxu0  ;;  %v842_v32 = vpack.c.bf16 %v745_v30, %v745_v30  ;;  %v2659_v37 = vpop.f32.mrb[1].mxu1  ;;  %v872_v0 = vpack.c.bf16 %v3841_v36, %v3841_v36 }
 0x1e8   : > { %v748_v33 = vpop.f32.mrb[3].mxu0  ;;  %v787_v38 = vpop.f32.mrb[2].mxu1 }
 0x1e9   : > { %v886_v34 = vsel %vm881_vm1, %v842_v32, 0  ;;  %v2660_v39 = vpop.f32.mrb[3].mxu1  ;;  %v1352_v7 = vsel %vm1350_vm2, %v872_v0, 0 }
 0x1ea   : > { %2662 = vmatpush3.bf16.xpose.msra.mxu1 %v886_v34 }
 0x1eb   : > { %794 = vrot.lane.b32.xlu1 %v743_v29, %s3332_s1  ;;  %791 = vrot.lane.b32.xlu0 %v743_v29, %s3333_s3 }
 0x1ec   : > { %2667 = vmatprep.subr.bf16.mxu1 %v3330_v4 }
 0x1ef   : > { %830 = vrot.lane.b32.xlu1 %v745_v30, %s3334_s18  ;;  %827 = vrot.lane.b32.xlu0 %v745_v30, %s3335_s20 }
 0x1f1   : > { %2664 = vmatmul.mubr.msk.bf16.vlgmr.msra.gmra.mrb[4].mxu1 %vm881_vm1, %v812_v35 }
 0x1f2   : > { %2669 = vmatprep.mubr.msk.bf16.mxu1 %vm3331_vm0, %v3330_v4 }
 0x1f3   : > { %833 = vrot.lane.b32.xlu1 %v745_v30, %s3336_s14  ;;  %797 = vrot.lane.b32.xlu0 %v743_v29, %s3335_s20 }
 0x1f7   : > { %836 = vrot.lane.b32.xlu1 %v745_v30, %s3337_s16  ;;  %800 = vrot.lane.b32.xlu0 %v743_v29, %s3334_s18 }
 0x1fb   : > { %839 = vrot.lane.b32.xlu1 %v745_v30, %s3338_s12  ;;  %803 = vrot.lane.b32.xlu0 %v743_v29, %s3336_s14 }
 0x1ff   : > { %809 = vrot.lane.b32.xlu1 %v743_v29, %s3338_s12  ;;  %806 = vrot.lane.b32.xlu0 %v743_v29, %s3337_s16 }
 0x259   : > { %v825_v40 = vpop.permute.xlu1 %824  ;;  %v822_v41 = vpop.permute.xlu0 %821 }
 0x25a   : > { %v843_v42 = vpack.c.bf16 %v822_v41, %v822_v41  ;;  %v844_v46 = vpack.c.bf16 %v825_v40, %v825_v40 }
 0x25c   : > { %v932_v43 = vsel %vm881_vm1, %v843_v42, 0  ;;  %v978_v51 = vsel %vm881_vm1, %v844_v46, 0 }
 0x25d   : > { %v795_v44 = vpop.permute.xlu1 %794  ;;  %v792_v45 = vpop.permute.xlu0 %791  ;;  %2668 = vmatpush3.bf16.xpose.msra.mxu1 %v932_v43 }
 0x25e   : > { %2673 = vmatprep.subr.bf16.mxu1 %v3330_v4  ;;  %v813_v49 = vpack.c.bf16 %v792_v45, %v792_v45  ;;  %v814_v58 = vpack.c.bf16 %v795_v44, %v795_v44 }
 0x261   : > { %v831_v47 = vpop.permute.xlu1 %830  ;;  %v828_v48 = vpop.permute.xlu0 %827 }
 0x262   : > { %v846_v50 = vpack.c.bf16 %v831_v47, %v831_v47  ;;  %v845_v55 = vpack.c.bf16 %v828_v48, %v828_v48 }
 0x264   : > { %v1070_v52 = vsel %vm881_vm1, %v846_v50, 0  ;;  %2670 = vmatmul.mubr.msk.bf16.vlgmr.msra.gmra.mrb[8].mxu1 %vm881_vm1, %v813_v49  ;;  %v1024_v61 = vsel %vm881_vm1, %v845_v55, 0 }
 0x265   : > { %2686 = vmatpush3.bf16.xpose.msra.mxu0 %v1070_v52  ;;  %v834_v53 = vpop.permute.xlu1 %833  ;;  %v798_v54 = vpop.permute.xlu0 %797  ;;  %2674 = vmatpush3.bf16.xpose.msra.mxu1 %v978_v51 }
 0x266   : > { %2675 = vmatprep.mubr.msk.bf16.mxu1 %vm3331_vm0, %v3330_v4  ;;  %2679 = vmatprep.subr.bf16.mxu1 %v3330_v4  ;;  %v847_v1 = vpack.c.bf16 %v834_v53, %v834_v53  ;;  %v815_v5 = vpack.c.bf16 %v798_v54, %v798_v54 }
 0x267   : > { %2697 = vmatprep.subr.bf16.mxu0 %v3330_v4 }
 0x268   : > { %v1116_v8 = vsel %vm881_vm1, %v847_v1, 0 }
 0x269   : > { %v837_v56 = vpop.permute.xlu1 %836  ;;  %v801_v57 = vpop.permute.xlu0 %800 }
 0x26a   : > { %v848_v59 = vpack.c.bf16 %v837_v56, %v837_v56  ;;  %v816_v60 = vpack.c.bf16 %v801_v57, %v801_v57 }
 0x26c   : > { %v1162_v62 = vsel %vm881_vm1, %v848_v59, 0  ;;  %2676 = vmatmul.mubr.msk.bf16.vlgmr.msra.gmra.mrb[12].mxu1 %vm881_vm1, %v814_v58  ;;  %2688 = vmatmul.mubr.msk.bf16.vlgmr.msra.gmra.mrb[4].mxu0 %vm881_vm1, %v816_v60 }
 0x26d   : > { %2698 = vmatpush3.bf16.xpose.msra.mxu0 %v1162_v62  ;;  %v804_v63 = vpop.permute.xlu0 %803  ;;  %2680 = vmatpush3.bf16.xpose.msra.mxu1 %v1024_v61  ;;  %v840_v9 = vpop.permute.xlu1 %839 }
 0x26e   : > { %2681 = vmatprep.mubr.msk.bf16.mxu1 %vm3331_vm0, %v3330_v4  ;;  %2699 = vmatprep.mubr.msk.bf16.mxu0 %vm3331_vm0, %v3330_v4  ;;  %v849_v10 = vpack.c.bf16 %v840_v9, %v840_v9  ;;  %v817_v11 = vpack.c.bf16 %v804_v63, %v804_v63 }
 0x26f   : > { %2691 = vmatprep.subr.bf16.mxu1 %v3330_v4  ;;  %2709 = vmatprep.subr.bf16.mxu0 %v3330_v4 }
 0x270   : > { %v1208_v12 = vsel %vm881_vm1, %v849_v10, 0 }
 0x271   : > { %v807_v2 = vpop.permute.xlu0 %806  ;;  %v810_v13 = vpop.permute.xlu1 %809 }
 0x272   : > { %v818_v6 = vpack.c.bf16 %v807_v2, %v807_v2  ;;  %v819_v14 = vpack.c.bf16 %v810_v13, %v810_v13 }
 0x274   : > { %2682 = vmatmul.mubr.msk.bf16.vlgmr.msra.gmra.mrb[16].mxu1 %vm881_vm1, %v815_v5  ;;  %2700 = vmatmul.mubr.msk.bf16.vlgmr.msra.gmra.mrb[8].mxu0 %vm881_vm1, %v818_v6 }
 0x275   : > { %2692 = vmatpush3.bf16.xpose.msra.mxu1 %v1116_v8  ;;  %2693 = vmatprep.mubr.msk.bf16.mxu1 %vm3331_vm0, %v3330_v4 }
 0x276   : > { %2703 = vmatprep.subr.bf16.mxu1 %v3330_v4  ;;  %2710 = vmatpush3.bf16.msra.mxu0 %v1352_v7 }
 0x277   : > { %2711 = vmatprep.mubr.msk.bf16.mxu0 %vm3331_vm0, %v3330_v4  ;;  %2721 = vmatprep.subr.bf16.mxu0 %v3330_v4 }
 0x27c   : > { %2694 = vmatmul.mubr.msk.bf16.vlgmr.msra.gmra.mrb[20].mxu1 %vm881_vm1, %v817_v11 }
 0x27d   : > { %2704 = vmatpush3.bf16.xpose.msra.mxu1 %v1208_v12  ;;  %2705 = vmatprep.mubr.msk.bf16.mxu1 %vm3331_vm0, %v3330_v4 }
 0x27e   : > { %2715 = vmatprep.subr.bf16.mxu1 %v3330_v4 }
 0x284   : > { %2706 = vmatmul.mubr.msk.bf16.vlgmr.msra.gmra.mrb[24].mxu1 %vm881_vm1, %v819_v14 }
 0x285   : > { %2717 = vmatprep.mubr.msk.bf16.mxu1 %vm3331_vm0, %v3330_v4 }
 0x2c4   : > { %v922_v16 = vpop.f32.mrb[4].mxu1 }
 0x2c5   : > { %v923_v17 = vadd.f32 %v922_v16, %v880_v15  ;;  %v2665_v18 = vpop.f32.mrb[5].mxu1 }
 0x2c6   : > { %v925_v19 = vpop.f32.mrb[6].mxu1 }
 0x2c7   : > { %v2666_v20 = vpop.f32.mrb[7].mxu1  ;;  %v1251_v21 = vsel %vm1250_vm3, %v923_v17, -inf }
 0x2c8   : > { %1252 = vmax.xlane.f32.xlu0 %v1251_v21 }
 0x337   : > { %v968_v22 = vpop.f32.mrb[8].mxu1 }
 0x338   : > { %v969_v23 = vadd.f32 %v968_v22, %v880_v15  ;;  %v2671_v25 = vpop.f32.mrb[9].mxu1 }
 0x339   : > { %v971_v26 = vpop.f32.mrb[10].mxu1 }
 0x33a   : > { %v2672_v27 = vpop.f32.mrb[11].mxu1  ;;  %v1254_v28 = vsel %vm1250_vm3, %v969_v23, -inf }
 0x33b   : > { %1255 = vmax.xlane.f32.xlu1 %v1254_v28 }
 0x33f   : > { %v1014_v29 = vpop.f32.mrb[12].mxu1  ;;  %v1106_v30 = vpop.f32.mrb[4].mxu0 }
 0x340   : > { %v1015_v31 = vadd.f32 %v1014_v29, %v880_v15  ;;  %v1107_v32 = vadd.f32 %v1106_v30, %v880_v15  ;;  %v2677_v33 = vpop.f32.mrb[13].mxu1  ;;  %v2689_v34 = vpop.f32.mrb[5].mxu0 }
 0x341   : > { %v1017_v35 = vpop.f32.mrb[14].mxu1  ;;  %v1109_v37 = vpop.f32.mrb[6].mxu0 }
 0x342   : > { %v2678_v38 = vpop.f32.mrb[15].mxu1  ;;  %v2690_v39 = vpop.f32.mrb[7].mxu0  ;;  %v1257_v40 = vsel %vm1250_vm3, %v1015_v31, -inf  ;;  %v1263_v41 = vsel %vm1250_vm3, %v1107_v32, -inf }
 0x343   : > { %1258 = vmax.xlane.f32.xlu0 %v1257_v40  ;;  %1264 = vmax.xlane.f32.xlu1 %v1263_v41 }
 0x347   : > { %v1060_v42 = vpop.f32.mrb[16].mxu1  ;;  %v1198_v43 = vpop.f32.mrb[8].mxu0 }
 0x348   : > { %v1061_v44 = vadd.f32 %v1060_v42, %v880_v15  ;;  %v1199_v45 = vadd.f32 %v1198_v43, %v880_v15  ;;  %v2683_v46 = vpop.f32.mrb[17].mxu1  ;;  %v2701_v47 = vpop.f32.mrb[9].mxu0 }
 0x349   : > { %v1063_v48 = vpop.f32.mrb[18].mxu1  ;;  %v1201_v49 = vpop.f32.mrb[10].mxu0 }
 0x34a   : > { %v2684_v50 = vpop.f32.mrb[19].mxu1  ;;  %v2702_v51 = vpop.f32.mrb[11].mxu0  ;;  %v1260_v52 = vsel %vm1250_vm3, %v1061_v44, -inf  ;;  %v1269_v53 = vsel %vm1250_vm3, %v1199_v45, -inf }
 0x34b   : > { %1261 = vmax.xlane.f32.xlu0 %v1260_v52  ;;  %1270 = vmax.xlane.f32.xlu1 %v1269_v53 }
 0x34f   : > { %v1152_v54 = vpop.f32.mrb[20].mxu1 }
 0x350   : > { %v1153_v55 = vadd.f32 %v1152_v54, %v880_v15  ;;  %v2695_v56 = vpop.f32.mrb[21].mxu1 }
 0x351   : > { %v1155_v57 = vpop.f32.mrb[22].mxu1 }
 0x352   : > { %v2696_v58 = vpop.f32.mrb[23].mxu1  ;;  %v1266_v59 = vsel %vm1250_vm3, %v1153_v55, -inf }
 0x353   : > { %1267 = vmax.xlane.f32.xlu0 %v1266_v59 }
 0x355   : > { %v1253_v2 = vpop.xlane.xlu0 %1252 }
 0x356   : > { %v1275_v5 = vsub.f32 %v923_v17, %v1253_v2 }
 0x357   : > { %v1244_v60 = vpop.f32.mrb[24].mxu1 }
 0x358   : > { %v1245_v61 = vadd.f32 %v1244_v60, %v880_v15  ;;  %v2707_v62 = vpop.f32.mrb[25].mxu1  ;;  %v1283_v6 = vmul.f32 1.442695, %v1275_v5 }
 0x359   : > { %v1247_v63 = vpop.f32.mrb[26].mxu1 }
 0x35a   : > { %v2708_v0 = vpop.f32.mrb[27].mxu1  ;;  %v1272_v1 = vsel %vm1250_vm3, %v1245_v61, -inf  ;;  %2998 = vpow2.f32 %v1283_v6 }
 0x35b   : > { %1273 = vmax.xlane.f32.xlu0 %v1272_v1 }
 0x35c   : > { %851 = vrot.lane.b32.xlu1 %v3841_v36, %s3333_s3 }
 0x360   : > { %857 = vrot.lane.b32.xlu1 %v3841_v36, %s3335_s20 }
 0x364   : > { %860 = vrot.lane.b32.xlu1 %v3841_v36, %s3334_s18  ;;  %v3899_v7 = vpop.eup %2998 }
 0x365   : > { %v1299_v8 = vsel %vm1250_vm3, %v3899_v7, 0.0 }
 0x371   : > { %854 = vrot.lane.b32.xlu0 %v3841_v36, %s3332_s1 }
 0x388   : > { %1300 = vadd.xlane.f32.xlu1 %v1299_v8 }
 0x3c8   : > { %v1256_v9 = vpop.xlane.xlu1 %1255 }
 0x3c9   : > { %v1276_v10 = vsub.f32 %v969_v23, %v1256_v9 }
 0x3cb   : > { %v1285_v11 = vmul.f32 1.442695, %v1276_v10 }
 0x3cd   : > { %3000 = vpow2.f32 %v1285_v11 }
 0x3d0   : > { %v1259_v12 = vpop.xlane.xlu0 %1258  ;;  %v1265_v13 = vpop.xlane.xlu1 %1264 }
 0x3d1   : > { %v1277_v14 = vsub.f32 %v1015_v31, %v1259_v12  ;;  %v1279_v15 = vsub.f32 %v1107_v32, %v1265_v13 }
 0x3d3   : > { %v1291_v16 = vmul.f32 1.442695, %v1279_v15  ;;  %v1287_v18 = vmul.f32 1.442695, %v1277_v14 }
 0x3d5   : > { %3002 = vpow2.f32 %v1291_v16 }
 0x3d6   : > { %3004 = vpow2.f32 %v1287_v18 }
 0x3d7   : > { %v3903_v17 = vpop.eup %3000 }
 0x3d8   : > { %v1262_v19 = vpop.xlane.xlu0 %1261  ;;  %v1271_v20 = vpop.xlane.xlu1 %1270  ;;  %v1302_v21 = vsel %vm1250_vm3, %v3903_v17, 0.0 }
 0x3d9   : > { %v1278_v22 = vsub.f32 %v1061_v44, %v1262_v19  ;;  %v1281_v25 = vsub.f32 %v1199_v45, %v1271_v20  ;;  %1303 = vadd.xlane.f32.xlu0 %v1302_v21 }
 0x3db   : > { %v1295_v23 = vmul.f32 1.442695, %v1281_v25  ;;  %v1289_v26 = vmul.f32 1.442695, %v1278_v22 }
 0x3dc   : > { %v852_v27 = vpop.permute.xlu1 %851 }
 0x3dd   : > { %v873_v28 = vpack.c.bf16 %v852_v27, %v852_v27  ;;  %3006 = vpow2.f32 %v1295_v23 }
 0x3de   : > { %3008 = vpow2.f32 %v1289_v26 }
 0x3df   : > { %v1398_v29 = vsel %vm1350_vm2, %v873_v28, 0  ;;  %v3908_v30 = vpop.eup %3002 }
 0x3e0   : > { %v1268_v31 = vpop.xlane.xlu0 %1267  ;;  %2716 = vmatpush3.bf16.msra.mxu1 %v1398_v29  ;;  %v1311_v33 = vsel %vm1250_vm3, %v3908_v30, 0.0  ;;  %v3005_v34 = vpop.eup %3004 }
 0x3e1   : > { %v1280_v32 = vsub.f32 %v1153_v55, %v1268_v31  ;;  %2727 = vmatprep.subr.bf16.mxu1 %v3330_v4  ;;  %1312 = vadd.xlane.f32.xlu1 %v1311_v33  ;;  %v1305_v37 = vsel %vm1250_vm3, %v3005_v34, 0.0  ;;  %v858_v49 = vpop.permute.xlu1 %857 }
 0x3e2   : > { %v875_v60 = vpack.c.bf16 %v858_v49, %v858_v49  ;;  %v2954_v49 = vld [vmem:[%s3746_s27 + $0x20] sm:$0xff]  }
 0x3e3   : > { %v1293_v35 = vmul.f32 1.442695, %v1280_v32 }
 0x3e4   : > { %v1490_v0 = vsel %vm1350_vm2, %v875_v60, 0 }
 0x3e5   : > { %3010 = vpow2.f32 %v1293_v35  ;;  %1306 = vadd.xlane.f32.xlu1 %v1305_v37  ;;  %v861_v50 = vpop.permute.xlu1 %860 }
 0x3e7   : > { %v3914_v38 = vpop.eup %3006 }
 0x3e8   : > { %v1274_v39 = vpop.xlane.xlu0 %1273  ;;  %v1317_v41 = vsel %vm1250_vm3, %v3914_v38, 0.0  ;;  %v3918_v42 = vpop.eup %3008 }
 0x3e9   : > { %v1282_v40 = vsub.f32 %v1245_v61, %v1274_v39  ;;  %1318 = vadd.xlane.f32.xlu0 %v1317_v41  ;;  %v1308_v44 = vsel %vm1250_vm3, %v3918_v42, 0.0 }
 0x3eb   : > { %v1297_v43 = vmul.f32 1.442695, %v1282_v40 }
 0x3ec   : > { %v855_v52 = vpop.permute.xlu0 %854 }
 0x3ed   : > { %3012 = vpow2.f32 %v1297_v43  ;;  %1309 = vadd.xlane.f32.xlu0 %v1308_v44  ;;  %v874_v54 = vpack.c.bf16 %v855_v52, %v855_v52  ;;  %v2951_v44 = vld [vmem:[%s3746_s27 + $0x8] sm:$0xff]  }
 0x3ef   : > { %v3922_v45 = vpop.eup %3010  ;;  %v1444_v57 = vsel %vm1350_vm2, %v874_v54, 0  ;;  %v2955_v54 = vld [vmem:[%s3746_s27 + $0x28] sm:$0xff]  }
 0x3f0   : > { %v1314_v46 = vsel %vm1250_vm3, %v3922_v45, 0.0 }
 0x3f1   : > { %1315 = vadd.xlane.f32.xlu0 %v1314_v46 }
 0x3f6   : > { %863 = vrot.lane.b32.xlu1 %v3841_v36, %s3336_s14 }
 0x3f7   : > { %v3926_v47 = vpop.eup %3012 }
 0x3f8   : > { %v1320_v48 = vsel %vm1250_vm3, %v3926_v47, 0.0 }
 0x3f9   : > { %1321 = vadd.xlane.f32.xlu0 %v1320_v48  ;;  %v2953_v48 = vld [vmem:[%s3746_s27 + $0x18] sm:$0xff]  }
 0x3fa   : > { %866 = vrot.lane.b32.xlu1 %v3841_v36, %s3337_s16 }
 0x40f   : > { %869 = vrot.lane.b32.xlu0 %v3841_v36, %s3338_s12 }
 0x415   : > { %v1301_v51 = vpop.xlane.xlu1 %1300 }
 0x416   : > { %3014 = vrcp.f32 %v1301_v51 }
 0x420   : > { %v3015_v53 = vpop.eup %3014 }
 0x421   : > { %v1331_v55 = vmul.f32 %v3015_v53, %v3899_v7  ;;  %v876_v7 = vpack.c.bf16 %v861_v50, %v861_v50 }
 0x423   : > { %v1339_v56 = vpack.c.bf16 %v1331_v55, %v1331_v55  ;;  %v1536_v12 = vsel %vm1350_vm2, %v876_v7, 0  ;;  %v2956_v55 = vld [vmem:[%s3746_s27 + $0x30] sm:$0xff]  }
 0x425   : > { %2712 = vmatmul.mubr.msk.bf16.vlgmr.msra.gmra.mrb[12].mxu0 %vm1250_vm3, %v1339_v56 }
 0x426   : > { %2722 = vmatpush3.bf16.msra.mxu0 %v1444_v57  ;;  %2723 = vmatprep.mubr.msk.bf16.mxu0 %vm3331_vm0, %v3330_v4 }
 0x427   : > { %2733 = vmatprep.subr.bf16.mxu0 %v3330_v4 }
 0x466   : > { %v1304_v36 = vpop.xlane.xlu0 %1303 }
 0x467   : > { %3016 = vrcp.f32 %v1304_v36 }
 0x46e   : > { %v1313_v58 = vpop.xlane.xlu1 %1312 }
 0x471   : > { %v3017_v59 = vpop.eup %3016 }
 0x472   : > { %v1332_v61 = vmul.f32 %v3017_v59, %v3903_v17  ;;  %v1307_v62 = vpop.xlane.xlu1 %1306 }
 0x473   : > { %3018 = vrcp.f32 %v1307_v62 }
 0x474   : > { %v1340_v63 = vpack.c.bf16 %v1332_v61, %v1332_v61  ;;  %3020 = vrcp.f32 %v1313_v58 }
 0x476   : > { %2718 = vmatmul.mubr.msk.bf16.vlgmr.msra.gmra.mrb[28].mxu1 %vm1250_vm3, %v1340_v63  ;;  %v1319_v1 = vpop.xlane.xlu0 %1318  ;;  %v864_v6 = vpop.permute.xlu1 %863  ;;  %v2957_v63 = vld [vmem:[%s3746_s27 + $0x38] sm:$0xff]  }
 0x477   : > { %2728 = vmatpush3.bf16.msra.mxu1 %v1490_v0  ;;  %2729 = vmatprep.mubr.msk.bf16.mxu1 %vm3331_vm0, %v3330_v4  ;;  %v877_v18 = vpack.c.bf16 %v864_v6, %v864_v6 }
 0x478   : > { %2739 = vmatprep.subr.bf16.mxu1 %v3330_v4 }
 0x479   : > { %v1582_v23 = vsel %vm1350_vm2, %v877_v18, 0 }
 0x47a   : > { %v1310_v2 = vpop.xlane.xlu0 %1309  ;;  %v867_v13 = vpop.permute.xlu1 %866 }
 0x47b   : > { %3022 = vrcp.f32 %v1310_v2  ;;  %v878_v19 = vpack.c.bf16 %v867_v13, %v867_v13 }
 0x47c   : > { %3024 = vrcp.f32 %v1319_v1 }
 0x47d   : > { %v3019_v5 = vpop.eup %3018  ;;  %v1628_v26 = vsel %vm1350_vm2, %v878_v19, 0 }
 0x47e   : > { %v1333_v8 = vmul.f32 %v3019_v5, %v3005_v34  ;;  %v1316_v9 = vpop.xlane.xlu0 %1315  ;;  %v3021_v11 = vpop.eup %3020 }
 0x47f   : > { %3026 = vrcp.f32 %v1316_v9  ;;  %v1335_v14 = vmul.f32 %v3021_v11, %v3908_v30 }
 0x480   : > { %v1341_v10 = vpack.c.bf16 %v1333_v8, %v1333_v8 }
 0x481   : > { %v1343_v22 = vpack.c.bf16 %v1335_v14, %v1335_v14 }
 0x482   : > { %2724 = vmatmul.mubr.msk.bf16.vlgmr.msra.gmra.mrb[16].mxu0 %vm1250_vm3, %v1341_v10 }
 0x483   : > { %2734 = vmatpush3.bf16.msra.mxu0 %v1536_v12  ;;  %2735 = vmatprep.mubr.msk.bf16.mxu0 %vm3331_vm0, %v3330_v4 }
 0x484   : > { %2745 = vmatprep.subr.bf16.mxu0 %v3330_v4 }
 0x485   : > { %v3023_v15 = vpop.eup %3022 }
 0x486   : > { %v1322_v16 = vpop.xlane.xlu0 %1321  ;;  %v1334_v17 = vmul.f32 %v3023_v15, %v3918_v42  ;;  %v3025_v20 = vpop.eup %3024  ;;  %v2950_v42 = vld [vmem:[%s3746_s27] sm:$0xff]  }
 0x487   : > { %3028 = vrcp.f32 %v1322_v16  ;;  %v1337_v28 = vmul.f32 %v3025_v20, %v3914_v38 }
 0x488   : > { %v1342_v21 = vpack.c.bf16 %v1334_v17, %v1334_v17 }
 0x489   : > { %v3027_v25 = vpop.eup %3026  ;;  %v1345_v32 = vpack.c.bf16 %v1337_v28, %v1337_v28 }
 0x48a   : > { %2730 = vmatmul.mubr.msk.bf16.vlgmr.msra.gmra.mrb[32].mxu1 %vm1250_vm3, %v1342_v21  ;;  %2736 = vmatmul.mubr.msk.bf16.vlgmr.msra.gmra.mrb[20].mxu0 %vm1250_vm3, %v1343_v22  ;;  %v870_v27 = vpop.permute.xlu0 %869  ;;  %v1336_v29 = vmul.f32 %v3027_v25, %v3922_v45 }
 0x48b   : > { %2740 = vmatpush3.bf16.msra.mxu1 %v1582_v23  ;;  %2746 = vmatpush3.bf16.msra.mxu0 %v1628_v26  ;;  %v879_v30 = vpack.c.bf16 %v870_v27, %v870_v27 }
 0x48c   : > { %2741 = vmatprep.mubr.msk.bf16.mxu1 %vm3331_vm0, %v3330_v4  ;;  %2747 = vmatprep.mubr.msk.bf16.mxu0 %vm3331_vm0, %v3330_v4  ;;  %v1344_v31 = vpack.c.bf16 %v1336_v29, %v1336_v29 }
 0x48d   : > { %2751 = vmatprep.subr.bf16.mxu1 %v3330_v4  ;;  %2757 = vmatprep.subr.bf16.mxu0 %v3330_v4  ;;  %v1674_v34 = vsel %vm1350_vm2, %v879_v30, 0 }
 0x491   : > { %v3029_v33 = vpop.eup %3028 }
 0x492   : > { %2742 = vmatmul.mubr.msk.bf16.vlgmr.msra.gmra.mrb[36].mxu1 %vm1250_vm3, %v1344_v31  ;;  %2748 = vmatmul.mubr.msk.bf16.vlgmr.msra.gmra.mrb[24].mxu0 %vm1250_vm3, %v1345_v32  ;;  %v1338_v35 = vmul.f32 %v3029_v33, %v3926_v47  ;;  %v2952_v47 = vld [vmem:[%s3746_s27 + $0x10] sm:$0xff]   ;;  %s2562_s27 = sshll.u32 %s4191_s10, 7 }
 0x493   : > { %2752 = vmatpush3.bf16.msra.mxu1 %v1674_v34  ;;  %2753 = vmatprep.mubr.msk.bf16.mxu1 %vm3331_vm0, %v3330_v4  ;;  %v2958_v34 = vld [vmem:[%s3748_s24] ss:$8 sps:$4 sm:$0xff]  }
 0x494   : > { %2773 = vmatprep.mubr.msk.bf16.mxu0 %vm3331_vm0, %v3330_v4  ;;  %v1346_v37 = vpack.c.bf16 %v1338_v35, %v1338_v35  ;;  %2758 = vmatpush3.bf16.msra.mxu0 %v2950_v42  ;;  %v2960_v35 = vld [vmem:[%s3748_s24 + $0x4] ss:$8 sps:$4 sm:$0xff]  }
 0x495   : > { %2759 = vmatprep.subr.bf16.mxu0 %v3330_v4  ;;  %1994 = vmatprep.subr.bf16.mxu1 %v2960_v35 }
 0x498   : > { %2760 = vmatpush3.bf16.msra.mxu0 %v2951_v44  ;;  %v2969_v44 = vld [vmem:[%s3748_s24 + $0x34] ss:$8 sps:$4 sm:$0xff]  }
 0x499   : > { %2761 = vmatprep.subr.bf16.mxu0 %v3330_v4 }
 0x49a   : > { %2754 = vmatmul.mubr.msk.bf16.vlgmr.msra.gmra.mrb[40].mxu1 %vm1250_vm3, %v1346_v37  ;;  %v2963_v37 = vld [vmem:[%s3748_s24 + $0x14] ss:$8 sps:$4 sm:$0xff]  }
 0x49b   : > { %2026 = vmatprep.mubr.bf16.mxu1 %v3329_v3  ;;  %1995 = vmatpush1.bf16.msra.mxu1 %v2958_v34 }
 0x49c   : > { %2762 = vmatpush3.bf16.msra.mxu0 %v2952_v47  ;;  %1996 = vmatprep.subr.bf16.mxu1 %v2963_v37  ;;  %v2970_v47 = vld [vmem:[%s3748_s24 + $0x40] ss:$8 sps:$4 sm:$0xff]  }
 0x49d   : > { %2763 = vmatprep.subr.bf16.mxu0 %v3330_v4 }
 0x4a0   : > { %2764 = vmatpush3.bf16.msra.mxu0 %v2953_v48  ;;  %v2973_v48 = vld [vmem:[%s3748_s24 + $0x50] ss:$8 sps:$4 sm:$0xff]  }
 0x4a1   : > { %2765 = vmatprep.subr.bf16.mxu0 %v3330_v4 }
 0x4a4   : > { %2766 = vmatpush3.bf16.msra.mxu0 %v2954_v49  ;;  %v2978_v49 = vld [vmem:[%s3748_s24 + $0x64] ss:$8 sps:$4 sm:$0xff]  }
 0x4a5   : > { %2767 = vmatprep.subr.bf16.mxu0 %v3330_v4 }
 0x4a8   : > { %2768 = vmatpush3.bf16.msra.mxu0 %v2955_v54  ;;  %v2983_v54 = vld [vmem:[%s3766_s2] sm:$0xff]  }
 0x4a9   : > { %2769 = vmatprep.subr.bf16.mxu0 %v3330_v4 }
 0x4ac   : > { %2770 = vmatpush3.bf16.msra.mxu0 %v2956_v55  ;;  %v2984_v55 = vld [vmem:[%s3766_s2 + $0x48] sm:$0xff]  }
 0x4ad   : > { %2771 = vmatprep.subr.bf16.mxu0 %v3330_v4 }
 0x4b0   : > { %2772 = vmatpush3.bf16.msra.mxu0 %v2957_v63  ;;  %v2993_v63 = vld [vmem:[%s3766_s2 + $0x28] sm:$0xff]  }
 0x4f8   : > { %v3977_v38 = vpop.f32.mrb[12].mxu0 }
 0x4f9   : > { %v2713_v39 = vpop.f32.mrb[13].mxu0 }
 0x4fa   : > { %v1391_v40 = vpop.f32.mrb[14].mxu0  ;;  %v2966_v39 = vld [vmem:[%s3748_s24 + $0x24] ss:$8 sps:$4 sm:$0xff]  }
 0x4fb   : > { %v2714_v41 = vpop.f32.mrb[15].mxu0  ;;  %v2964_v40 = vld [vmem:[%s3748_s24 + $0x20] ss:$8 sps:$4 sm:$0xff]  }
 0x549   : > { %v1434_v43 = vpop.f32.mrb[28].mxu1 }
 0x54a   : > { %1717 = vrot.lane.b32.xlu1 %v1434_v43, %s3338_s12  ;;  %v2719_v45 = vpop.f32.mrb[29].mxu1 }
 0x54b   : > { %v1437_v46 = vpop.f32.mrb[30].mxu1  ;;  %v2967_v45 = vld [vmem:[%s3748_s24 + $0x30] ss:$8 sps:$4 sm:$0xff]  }
 0x54c   : > { %v2720_v3 = vpop.f32.mrb[31].mxu1  ;;  %v2972_v46 = vld [vmem:[%s3748_s24 + $0x44] ss:$8 sps:$4 sm:$0xff]  }
 0x54d   : > { %v2975_v3 = vld [vmem:[%s3748_s24 + $0x54] ss:$8 sps:$4 sm:$0xff]  }
 0x555   : > { %v1480_v50 = vpop.f32.mrb[16].mxu0 }
 0x556   : > { %1721 = vrot.lane.b32.xlu0 %v1480_v50, %s3337_s16  ;;  %v2725_v51 = vpop.f32.mrb[17].mxu0  ;;  %v2976_v50 = vld [vmem:[%s3748_s24 + $0x60] ss:$8 sps:$4 sm:$0xff]  }
 0x557   : > { %v1483_v52 = vpop.f32.mrb[18].mxu0  ;;  %v2981_v51 = vld [vmem:[%s3748_s24 + $0x74] ss:$8 sps:$4 sm:$0xff]  }
 0x558   : > { %v2726_v53 = vpop.f32.mrb[19].mxu0  ;;  %v2979_v52 = vld [vmem:[%s3748_s24 + $0x70] ss:$8 sps:$4 sm:$0xff]  }
 0x559   : > { %v2982_v53 = vld [vmem:[%s3766_s2 + $0x40] sm:$0xff]  }
 0x55a   : > { %2619 = vmatprep.subr.bf16.mxu0 %v2982_v53 }
 0x55d   : > { %v1526_v56 = vpop.f32.mrb[32].mxu1  ;;  %v1572_v57 = vpop.f32.mrb[20].mxu0 }
 0x55e   : > { %1725 = vrot.lane.b32.xlu1 %v1526_v56, %s3336_s14  ;;  %v2731_v36 = vpop.f32.mrb[33].mxu1  ;;  %1729 = vrot.lane.b32.xlu0 %v1572_v57, %s3334_s18  ;;  %v2737_v58 = vpop.f32.mrb[21].mxu0  ;;  %v2985_v56 = vld [vmem:[%s3766_s2 + $0x8] sm:$0xff]   ;;  %v2986_v57 = vld [vmem:[%s3766_s2 + $0x50] sm:$0xff]  }
 0x55f   : > { %v1529_v59 = vpop.f32.mrb[34].mxu1  ;;  %v1575_v60 = vpop.f32.mrb[22].mxu0  ;;  %v2987_v36 = vld [vmem:[%s3766_s2 + $0x10] sm:$0xff]   ;;  %v2988_v58 = vld [vmem:[%s3766_s2 + $0x58] sm:$0xff]  }
 0x560   : > { %v2732_v61 = vpop.f32.mrb[35].mxu1  ;;  %v2738_v62 = vpop.f32.mrb[23].mxu0  ;;  %v2989_v59 = vld [vmem:[%s3766_s2 + $0x18] sm:$0xff]   ;;  %v2990_v60 = vld [vmem:[%s3766_s2 + $0x60] sm:$0xff]  }
 0x561   : > { %v2991_v61 = vld [vmem:[%s3766_s2 + $0x20] sm:$0xff]   ;;  %v2992_v62 = vld [vmem:[%s3766_s2 + $0x68] sm:$0xff]  }
 0x565   : > { %v1618_v0 = vpop.f32.mrb[36].mxu1  ;;  %v1664_v1 = vpop.f32.mrb[24].mxu0 }
 0x566   : > { %1733 = vrot.lane.b32.xlu1 %v1618_v0, %s3335_s20  ;;  %v2743_v2 = vpop.f32.mrb[37].mxu1  ;;  %1737 = vrot.lane.b32.xlu0 %v1664_v1, %s3332_s1  ;;  %v2749_v5 = vpop.f32.mrb[25].mxu0 }
 0x567   : > { %v1621_v6 = vpop.f32.mrb[38].mxu1  ;;  %v1667_v7 = vpop.f32.mrb[26].mxu0  ;;  %v1875_v2 = vlaneseq }
 0x568   : > { %v2744_v8 = vpop.f32.mrb[39].mxu1  ;;  %v2750_v9 = vpop.f32.mrb[27].mxu0 }
 0x569   : > { %v1876_v6 = vshrl.u32 %v1875_v2, 7  ;;  %v1774_v8 = vld [vmem:[%s3759_s23] sm:$0x1f]  ;;  %s4192_s23 = sld [smem:[#allocation39_spill]] }
 0x56b   : > { %v1877_v7 = vsub.s32 0, %v1876_v6  ;;  %v1882_v9 = vsub.s32 1, %v1876_v6  ;;  %v2073_v34 = vsub.s32 4, %v1876_v6 }
 0x56d   : > { %v1710_v10 = vpop.f32.mrb[40].mxu1  ;;  %v2074_v37 = vrot.slane %v1774_v8, %v2073_v34 }
 0x56e   : > { %1741 = vrot.lane.b32.xlu1 %v1710_v10, %s3333_s3  ;;  %v2755_v11 = vpop.f32.mrb[41].mxu1  ;;  %v1878_v10 = vrot.slane %v1774_v8, %v1877_v7 }
 0x56f   : > { %v1713_v12 = vpop.f32.mrb[42].mxu1  ;;  %s4043_s6 = scalar_lea.hbm %s4192_s23, %s2562_s27 }
 0x570   : > { %v2756_v4 = vpop.f32.mrb[43].mxu1 }
 0x571   : > { %v1883_v4 = vrot.slane %v1774_v8, %v1882_v9 }
 0x5bc   : > { %v1718_v13 = vpop.permute.xlu1 %1717 }
 0x5bd   : > { %v1744_v16 = vsel %vm881_vm1, %v3977_v38, %v1718_v13  ;;  %v2961_v38 = vld [vmem:[%s3748_s24 + $0x10] ss:$8 sps:$4 sm:$0xff]   ;;  %s2248_s24 = sshll.u32 %s3768_s8, 4  ;;  %s4045_s24 = int_to_ptr.vmem [resolvable:$true] %s2248_s24 }
 0x5be   : > { %1997 = vmatpush1.bf16.msra.mxu1 %v2961_v38  ;;  %s3184_s26 = scalar_lea.vmem %s4045_s24, 128 }
 0x5bf   : > { %1998 = vmatprep.subr.bf16.mxu1 %v2966_v39  ;;  %p3185_p11 = scmp.ne.s32.totalorder %s4045_s24, %s3184_s26 }
 0x5c1   : > { %p3186_p4 = pnand %p3185_p11, %p4193_p9 }
 0x5c2   : > { %1999 = vmatpush1.bf16.msra.mxu1 %v2964_v40 }
 0x5c3   : > { %2000 = vmatprep.subr.bf16.mxu1 %v2969_v44  ;;  %p3187_p5 = pneg %p3186_p4 }
 0x5c6   : > { %2001 = vmatpush1.bf16.msra.mxu1 %v2967_v45 }
 0x5c7   : > { %2002 = vmatprep.subr.bf16.mxu1 %v2972_v46 }
 0x5c8   : > { %v1722_v14 = vpop.permute.xlu0 %1721 }
 0x5c9   : > { %v1746_v18 = vsel %vm1745_vm4, %v1744_v16, %v1722_v14  ;;  %v2994_v16 = vld [vmem:[%s3766_s2 + $0x70] sm:$0xff]  }
 0x5ca   : > { %2003 = vmatpush1.bf16.msra.mxu1 %v2970_v47 }
 0x5cb   : > { %2004 = vmatprep.subr.bf16.mxu1 %v2975_v3 }
 0x5ce   : > { %2005 = vmatpush1.bf16.msra.mxu1 %v2973_v48 }
 0x5cf   : > { %2006 = vmatprep.subr.bf16.mxu1 %v2978_v49  ;;  %v2225_v49 = vsub.s32 2, %v1876_v6 }
 0x5d0   : > { %v1726_v15 = vpop.permute.xlu1 %1725  ;;  %v1730_v19 = vpop.permute.xlu0 %1729 }
 0x5d1   : > { %v1748_v17 = vsel %vm1747_vm5, %v1746_v18, %v1726_v15  ;;  %v2995_v18 = vld [vmem:[%s3766_s2 + $0x30] sm:$0xff]  }
 0x5d2   : > { %v1750_v21 = vsel %vm1749_vm6, %v1748_v17, %v1730_v19  ;;  %2007 = vmatpush1.bf16.msra.mxu1 %v2976_v50  ;;  %v2996_v17 = vld [vmem:[%s3766_s2 + $0x78] sm:$0xff]   ;;  %v2230_v50 = vsub.s32 3, %v1876_v6 }
 0x5d3   : > { %2008 = vmatprep.subr.bf16.mxu1 %v2981_v51  ;;  %v2997_v19 = vld [vmem:[%s3766_s2 + $0x38] sm:$0xff]   ;;  %v2226_v51 = vrot.slane %v1774_v8, %v2225_v49 }
 0x5d6   : > { %2009 = vmatpush1.bf16.msra.mxu1 %v2979_v52 }
 0x5d8   : > { %v1734_v20 = vpop.permute.xlu1 %1733  ;;  %v1738_v25 = vpop.permute.xlu0 %1737 }
 0x5d9   : > { %v1752_v22 = vsel %vm1751_vm7, %v1750_v21, %v1734_v20  ;;  %v1902_v20 = vld [vmem:[%s3764_s7] sm:$0x3]  ;;  %s3339_s7 = smov [#allocation12]  }
 0x5da   : > { %v1754_v23 = vsel %vm1753_vm8, %v1752_v22, %v1738_v25  ;;  %v1907_v21 = vrot.slane %v1902_v20, %v1877_v7  ;;  %v1911_v22 = vrot.slane %v1902_v20, %v1882_v9  ;;  %s3188_s2 = sshll.u32 %s3339_s7, 4  ;;  %s3189_s2 = int_to_ptr.vmem [resolvable:$false] %s3188_s2 }
 0x5db   : > { %s3190_s4 = scalar_lea.vmem %s3189_s2, 256  ;;  %p3191_p6 = scmp.lt.s32.totalorder %s4045_s24, %s3189_s2 }
 0x5dc   : > { %p3192_p13 = scmp.lt.s32.totalorder %s3190_s4, %s3184_s26 }
 0x5de   : > { %p3193_p12 = por %p3192_p13, %p3191_p6 }
 0x5e0   : > { %v1742_v26 = vpop.permute.xlu1 %1741  ;;  %p3194_p0 = pnand %p3193_p12, %p3187_p5 }
 0x5e1   : > { %v1756_v27 = vsel %vm1755_vm9, %v1754_v23, %v1742_v26 }
 0x5e2   : > { %v1757_v28 = vpack.c.bf16 %v1756_v27, %v1756_v27 }
 0x5e4   : > { %2774 = vmatmul.mubr.bf16.vlgmr.msra.gmra.mrb[28].mxu0 %v1757_v28 }
 0x5e5   : > { %2620 = vmatpush3.bf16.msra.mxu0 %v2983_v54  ;;  %v2231_v54 = vrot.slane %v1774_v8, %v2230_v50 }
 0x5e6   : > { %2621 = vmatprep.subr.bf16.mxu0 %v2984_v55 }
 0x5e9   : > { %2622 = vmatpush3.bf16.msra.mxu0 %v2985_v56 }
 0x5ea   : > { %2623 = vmatprep.subr.bf16.mxu0 %v2986_v57 }
 0x5ed   : > { %2624 = vmatpush3.bf16.msra.mxu0 %v2987_v36 }
 0x5ee   : > { %2625 = vmatprep.subr.bf16.mxu0 %v2988_v58 }
 0x5f1   : > { %2626 = vmatpush3.bf16.msra.mxu0 %v2989_v59 }
 0x5f2   : > { %2627 = vmatprep.subr.bf16.mxu0 %v2990_v60 }
 0x5f5   : > { %2628 = vmatpush3.bf16.msra.mxu0 %v2991_v61 }
 0x5f6   : > { %2629 = vmatprep.subr.bf16.mxu0 %v2992_v62 }
 0x5f9   : > { %2630 = vmatpush3.bf16.msra.mxu0 %v2993_v63 }
 0x5fa   : > { %2631 = vmatprep.subr.bf16.mxu0 %v2994_v16 }
 0x5fd   : > { %2632 = vmatpush3.bf16.msra.mxu0 %v2995_v18 }
 0x5fe   : > { %2633 = vmatprep.subr.bf16.mxu0 %v2996_v17 }
 0x601   : > { %2634 = vmatpush3.bf16.msra.mxu0 %v2997_v19 }
 0x6b7   : > { %v1857_v29 = vpop.f32.mrb[28].mxu0 }
 0x6b8   : > { %v1858_v30 = vadd.f32 %v1857_v29, %v3803_v24  ;;  %v2775_v31 = vpop.f32.mrb[29].mxu0 }
 0x6b9   : > { %v1860_v32 = vpop.f32.mrb[30].mxu0 }
 0x6ba   : > { %1863 = vadd.xlane.f32.xlu0 %v1858_v30  ;;  %v2776_v33 = vpop.f32.mrb[31].mxu0 }
 0x747   : > { %v1864_v24 = vpop.xlane.xlu0 %1863 }
 0x748   : > { %v1866_v41 = vmul.f32 0.0078125, %v1864_v24 }
 0x74a   : > { %v1867_v42 = vsub.f32 %v1858_v30, %v1866_v41 }
 0x74c   : > { %v1868_v43 = vmul.f32 %v1867_v42, %v1867_v42 }
 0x74e   : > { %1869 = vadd.xlane.f32.xlu1 %v1868_v43 }
 0x7db   : > { %v1870_v0 = vpop.xlane.xlu1 %1869 }
 0x7dc   : > { %v1871_v1 = vmul.f32 0.0078125, %v1870_v0 }
 0x7de   : > { %v1872_v5 = vadd.f32 1e-05, %v1871_v1 }
 0x7e0   : > { %3030 = vrsqrt.f32 %v1872_v5 }
 0x7ea   : > { %v3031_v11 = vpop.eup %3030 }
 0x7eb   : > { %v1874_v12 = vmul.f32 %v3031_v11, %v1867_v42 }
 0x7ed   : > { %v1879_v13 = vmul.f32 %v1878_v10, %v1874_v12 }
 0x7ef   : > { %v1884_v14 = vadd.f32 %v1883_v4, %v1879_v13 }
 0x7f1   : > { %v1885_v15 = vpack.c.bf16 %v1884_v14, %v1884_v14 }
 0x7f3   : > { %2027 = vmatmul.mubr.bf16.vlgmr.msra.gmra.mrb[44].mxu1 %v1885_v15 }
 0x8c6   : > { %v2028_v25 = vpop.f32.mrb[44].mxu1 }
 0x8c7   : > { %v2029_v23 = vadd.f32 %v2028_v25, %v1907_v21  ;;  %v2030_v26 = vpop.f32.mrb[45].mxu1 }
 0x8c8   : > { %v2031_v27 = vadd.f32 %v2030_v26, %v1911_v22  ;;  %v2032_v28 = vpop.f32.mrb[46].mxu1 }
 0x8c9   : > { %v2035_v29 = vmax.f32 %v2029_v23, 0.0  ;;  %v2033_v30 = vpop.f32.mrb[47].mxu1 }
 0x8ca   : > { %v2036_v31 = vmax.f32 %v2031_v27, 0.0 }
 0x8cb   : > { %v2037_v33 = vpack.c.bf16 %v2035_v29, %v2035_v29 }
 0x8cc   : > { %v2038_v32 = vpack.c.bf16 %v2036_v31, %v2036_v31 }
 0x8ce   : > { %2203 = vmatprep.mubr.bf16.mxu0 %v2038_v32 }
 0x8cf   : > { %2204 = vmatmul.mubr.bf16.vlgmr.msra.gmra.mrb[32].mxu0 %v2037_v33 }
 0x9a2   : > { %v2635_v35 = vpop.f32.mrb[32].mxu0 }
 0x9a3   : > { %v2636_v38 = vpop.f32.mrb[33].mxu0 }
 0x9a4   : > { %v2637_v39 = vadd.f32 %v2636_v38, %v2635_v35  ;;  %v2638_v40 = vpop.f32.mrb[34].mxu0 }
 0x9a5   : > { %v2639_v24 = vpop.f32.mrb[35].mxu0 }
 0x9a6   : > { %v2206_v41 = vadd.f32 %v2637_v39, %v2074_v37 }
 0x9a8   : > { %v2211_v42 = vadd.f32 %v2206_v41, %v1884_v14 }
 0x9aa   : > { %2212 = vadd.xlane.f32.xlu0 %v2211_v42 }
 0xa37   : > { %v2213_v43 = vpop.xlane.xlu0 %2212 }
 0xa38   : > { %v2214_v44 = vmul.f32 0.0078125, %v2213_v43 }
 0xa3a   : > { %v2215_v45 = vsub.f32 %v2211_v42, %v2214_v44 }
 0xa3c   : > { %v2216_v46 = vmul.f32 %v2215_v45, %v2215_v45 }
 0xa3e   : > { %2217 = vadd.xlane.f32.xlu0 %v2216_v46 }
 0xacb   : > { %v2218_v47 = vpop.xlane.xlu0 %2217 }
 0xacc   : > { %v2219_v3 = vmul.f32 0.0078125, %v2218_v47 }
 0xace   : > { %v2220_v48 = vadd.f32 1e-05, %v2219_v3 }
 0xad0   : > { %3032 = vrsqrt.f32 %v2220_v48 }
 0xada   : > { %v3033_v52 = vpop.eup %3032 }
 0xadb   : > { %v2222_v53 = vmul.f32 %v3033_v52, %v2215_v45 }
 0xadd   : > { %v2227_v55 = vmul.f32 %v2226_v51, %v2222_v53 }
 0xadf   : > { %v2232_v56 = vadd.f32 %v2231_v54, %v2227_v55 }
 0xae1   : > { %2233 = vst [vmem:[%s3768_s8] sm:$0xff] %v2232_v56 }
 0xae2   : > { %3197 = shalt.err (!%p3194_p0)
}
 0xae3   : > { %s3198_s11 = scalar_lea.hbm %s4043_s6, 128  ;;  %s3202_s22 = scalar_lea.hbm %s4192_s23, 256 }
 0xae4   : > { %p3199_p10 = scmp.ne.s32.totalorder %s4043_s6, %s3198_s11  ;;  %p3203_p1 = scmp.lt.u32.totalorder %s4043_s6, %s4192_s23 }
 0xae5   : > { %p3204_p3 = scmp.lt.u32.totalorder %s3202_s22, %s3198_s11  ;;  %p3206_p11 = scmp.lt.u32.totalorder %s3198_s11, %s4043_s6 }
 0xae6   : > { %p3200_p7 = pnand %p3199_p10, %p4193_p9 }
 0xae7   : > { %p3205_p8 = por %p3204_p3, %p3203_p1 }
 0xae8   : > { %p3201_p2 = pneg %p3200_p7 }
 0xae9   : > { %p3207_p4 = por %p3206_p11, %p3205_p8 }
 0xaeb   : > { %p3208_p5 = pnand %p3207_p4, %p3201_p2 }
 0xaed   : > { %3211 = shalt.err (!%p3208_p5)
}
 0xaee   : > { %2790 = dma.vmem_to_hbm [thread:$0]  (%p4193_p9), %s4045_s24, 128, %s4043_s6, %s2235_s19  }
 0xaef PF: > { %p2813_p6 = scmp.ge.s32.totalorder %s3316_s15, 2  ;;  %s2260_s3 = sand.u32 1, %s3288_s30  }
 0xaf0   : > { %p4194_p13 = scmp.ne.s32.totalorder %s4173_s0, 0  ;;  %s2261_s18 = scalar_lea.sflag [#allocation5], %s2260_s3 }
 0xaf2   : > { %p2809_p12 = pnand %p2813_p6, %p4194_p13 }
 0xaf4   : > { %3271 = dma.done.wait (!%p2809_p12), %s2261_s18, 128  }
 0xaf5   : > { %3273 = vsyncadd (!%p2809_p12), %s2261_s18, 4294967168  ;;  %s30_s15 = sadd.s32 1, %s3316_s15   ;;  %s4195_s27 = sld [smem:[#allocation19_spill]] }
 0xaf6   : > { %p27_p0 = scmp.ge.s32.totalorder %s30_s15, 6   ;;  %s4196_s28 = sld [smem:[#allocation20_spill]] }
 0xaf7   : > { %s4197_s29 = sld [smem:[#allocation30_spill]]  ;;  %s4198_s20 = sld [smem:[#allocation21_spill]] }
 0xaf8   : > { %s4199_s10 = sld [smem:[#allocation31_spill]]  ;;  %s4200_s12 = sld [smem:[#allocation24_spill]] }
 0xaf9   : > { %s4201_s14 = sld [smem:[#allocation26_spill]]  ;;  %s4202_s16 = sld [smem:[#allocation27_spill]] }
 0xafa   : > { %s4203_s30 = smov %s3292_s9  ;;  %s4205_s11 = smov %s3308_s13 }
 0xafb   :  { %29 = sbr.rel (!%p27_p0) target bundleno = 22 (0x16), region = 194 }
 0xafd   : > { %s4204_s9 = smov %s4198_s20 }
 0xaff   : > { %s4206_s13 = smov %s4201_s14  ;;  %s4207_s14 = smov %s4202_s16 }
 0xb02   :  { %2266 = vsyncpa [#allocation4], 1 }
 0xb03   :  { %2268 = vsyncpa [#allocation4 + $0x1], 1 }
 0xb04   :  { %2269 = vsyncpa [#allocation7], 1 }
 0xb05   :  { %2271 = vsyncpa [#allocation7 + $0x1], 1 }
 0xb06   :  { %2272 = vsyncpa [#allocation10], 1 }
 0xb07   :  { %2274 = vsyncpa [#allocation10 + $0x1], 1 }
 0xb08   :  { %2275 = vsyncpa [#allocation5], 1 }
 0xb09   :  { %2277 = vsyncpa [#allocation5 + $0x1], 1 }
 0xb0a   :  { %2278 = vsyncmov [#allocation2] }
 0xb0d   :  { %s2279_s0 = vpop.sfrf %2278 }
 0xb0e   :  { %p2565_p9 = scmp.ne.s32.totalorder %s2279_s0, 0 }
 0xb10   :  { %2283 = shalt.err (%p2565_p9)  }

</bundles_post_ra>
